<compile_context>
chip_gen: v6e
topology: v6e:2x2x1
jax: 0.10.0
libtpu: 0.0.40
codegen_flags: <defaults>
</compile_context>

<pallas_src>
import jax
import jax.numpy as jnp
from jax.experimental import pallas as pl
from jax.experimental.pallas import tpu as pltpu

LANE = 128
SUBLANE = 8
NUM_EMOTIONS = 8


def _round_up(x, m):
    return (x + m - 1) // m * m


def _cdiv(a, b):
    return -(-a // b)


def _maybe_pad2(a, rows, cols):
    """Zero-pad a 2-D array up to (rows, cols); no-op if already that shape."""
    if a.shape == (rows, cols):
        return a
    return jnp.pad(a, ((0, rows - a.shape[0]), (0, cols - a.shape[1])))


# -----------------------------------------------------------------------------
# Kernel
# -----------------------------------------------------------------------------
def emotional_intelligence_kernel(
    state_ref, context_ref,
    enc_w_ref, enc_b_ref,
    fused_w_ref, fused_b_ref,     # [det1_w | w_ih(r|z|n)], [det1_b | b_ih]
    det2_w_ref, det2_b_ref,
    w_hh_ref, b_hh_ref,
    logits_ref, emo_state_ref,
):
    Hp = enc_w_ref.shape[1]        # lane-padded hidden dim
    Hhp = det2_w_ref.shape[0]      # lane-padded hidden_dim // 2
    wd = enc_w_ref.dtype           # weight dtype (bf16 by default)

    x = state_ref[...]             # (TB, Hp) f32
    h = context_ref[...]           # (TB, Hp) f32
    xw = x.astype(wd)              # cast once
    hw = h.astype(wd)              # cast once

    # --- emotion_encoder: Linear(H, H) ---
    emb = jnp.dot(xw, enc_w_ref[...],
                  preferred_element_type=jnp.float32) + enc_b_ref[...]
    embw = emb.astype(wd)          # cast once; feeds the fused detector/GRU-ih dot

    # --- fused dot: [detector hidden | GRU input gates r|z|n] in one MXU pass ---
    fused = jnp.dot(embw, fused_w_ref[...],
                    preferred_element_type=jnp.float32) + fused_b_ref[...]
    d1 = jnp.maximum(fused[:, :Hhp], 0.0)     # ReLU(Linear(H, H//2))
    gi = fused[:, Hhp:]                       # (TB, 3*Hp) input-gate pre-activations

    # --- emotion_detector second layer: Linear(H//2, 8) (padded to 128 lanes) ---
    logits = jnp.dot(d1.astype(wd), det2_w_ref[...],
                     preferred_element_type=jnp.float32) + det2_b_ref[...]
    logits_ref[...] = logits.astype(logits_ref.dtype)

    # --- emotional_memory: GRUCell(H, H), gate order r|z|n, lane-aligned slabs ---
    gh = jnp.dot(hw, w_hh_ref[...],
                 preferred_element_type=jnp.float32) + b_hh_ref[...]

    i_r, i_z, i_n = gi[:, 0:Hp], gi[:, Hp:2 * Hp], gi[:, 2 * Hp:3 * Hp]
    h_r, h_z, h_n = gh[:, 0:Hp], gh[:, Hp:2 * Hp], gh[:, 2 * Hp:3 * Hp]

    r = jax.nn.sigmoid(i_r + h_r)
    z = jax.nn.sigmoid(i_z + h_z)
    n = jnp.tanh(i_n + r * h_n)               # r gates the hidden n-term (PyTorch)
    new_h = (1.0 - z) * n + z * h
    emo_state_ref[...] = new_h.astype(emo_state_ref.dtype)


# -----------------------------------------------------------------------------
# Host wrapper
# -----------------------------------------------------------------------------
def _vmem_limit_bytes():
    """Generation-aware scoped-VMEM limit (v7x: 64 MiB/TC, v5e/v6e: 128 MiB)."""
    cap = 128 * 1024 * 1024
    try:
        cap = int(getattr(pltpu.get_tpu_info(), "vmem_capacity_bytes", cap))
    except Exception:
        pass
    return min(cap * 7 // 8, 100 * 1024 * 1024)   # leave compiler-scratch headroom


def _choose_tile_b(B, block_b, weight_bytes, vmem_limit, Hp, Hhp, Np):
    Bs = _round_up(B, SUBLANE)
    tb = min(_round_up(block_b, SUBLANE), Bs)

    # Per-batch-row VMEM that scales with TB: double-buffered activation I/O
    # tiles plus the f32 intermediates (emb, fused, gh, gates) live in one step.
    per_row = (2 * 2 * Hp * 4
               + 2 * (Np + Hp) * 4
               + (2 * (Hhp + 3 * Hp) + 4 * Hp + Hhp) * 4)
    budget = max(vmem_limit - weight_bytes, SUBLANE * per_row)
    while tb > SUBLANE and tb * per_row > budget:
        tb = _round_up(tb // 2, SUBLANE)

    # Guarantee >= 2 grid steps (v7x megacore + activation-DMA pipelining)
    # whenever the batch is big enough to split.
    if Bs > SUBLANE and _cdiv(Bs, tb) < 2:
        tb = _round_up(_cdiv(Bs, 2), SUBLANE)

    # MXU-friendly rounding: 256-row tiles on v6e/v7x, 128 on v5e.
    if tb >= 256:
        tb = tb // 256 * 256
    elif tb >= 128:
        tb = tb // 128 * 128
    return tb


def emotional_intelligence_forward(state, context, params, *, block_b=256,
                                   weight_dtype=jnp.bfloat16):
    B, H = state.shape
    Hh = H // 2
    Hp = _round_up(H, LANE)
    Hhp = _round_up(Hh, LANE)
    Np = _round_up(NUM_EMOTIONS, LANE)

    f32 = jnp.float32
    wd = jnp.dtype(weight_dtype)

    # ---- weight prep: lane-padded, per-gate slabs, emb-consumers fused ----
    enc_w = _maybe_pad2(params["enc_w"], Hp, Hp).astype(wd)
    enc_b = _maybe_pad2(params["enc_b"], 1, Hp).astype(f32)
    det1_w = _maybe_pad2(params["det1_w"], Hp, Hhp)
    det1_b = _maybe_pad2(params["det1_b"], 1, Hhp)
    det2_w = _maybe_pad2(params["det2_w"], Hhp, Np).astype(wd)
    det2_b = _maybe_pad2(params["det2_b"], 1, Np).astype(f32)

    def split_gates(w, b):
        # w: (H, 3H), b: (1, 3H); gate order r|z|n.  (PyTorch GRUCell biases are
        # (3H,) — reshape to (1, 3H) before calling this wrapper.)
        ws = [_maybe_pad2(w[:, k * H:(k + 1) * H], Hp, Hp) for k in range(3)]
        bs = [_maybe_pad2(b[:, k * H:(k + 1) * H], 1, Hp) for k in range(3)]
        return ws, bs

    wih_s, bih_s = split_gates(params["w_ih"], params["b_ih"])
    whh_s, bhh_s = split_gates(params["w_hh"], params["b_hh"])

    fused_w = jnp.concatenate([det1_w] + wih_s, axis=1).astype(wd)   # (Hp, Hhp+3Hp)
    fused_b = jnp.concatenate([det1_b] + bih_s, axis=1).astype(f32)
    w_hh = jnp.concatenate(whh_s, axis=1).astype(wd)                 # (Hp, 3Hp)
    b_hh = jnp.concatenate(bhh_s, axis=1).astype(f32)

    weights = (enc_w, enc_b, fused_w, fused_b, det2_w, det2_b, w_hh, b_hh)
    weight_bytes = sum(int(w.size) * w.dtype.itemsize for w in weights)

    vmem_limit = _vmem_limit_bytes()
    TB = _choose_tile_b(B, block_b, weight_bytes, vmem_limit, Hp, Hhp, Np)
    Bp = _round_up(B, TB)
    # TODO(synk): for Hp large enough that single-buffered bf16 weights exceed
    # ~half of per-generation VMEM, add a second "arbitrary" grid axis tiling
    # the fused / GRU weight columns instead of keeping all weights resident.

    state_p = _maybe_pad2(state.astype(f32), Bp, Hp)
    context_p = _maybe_pad2(context.astype(f32), Bp, Hp)
    inputs = (state_p, context_p) + weights

    out_shapes = (jax.ShapeDtypeStruct((Bp, Np), f32),
                  jax.ShapeDtypeStruct((Bp, Hp), f32))
    out_specs = (pl.BlockSpec((TB, Np), lambda i: (i, 0)),
                 pl.BlockSpec((TB, Hp), lambda i: (i, 0)))

    flops = 2 * Bp * (Hp * Hp + Hp * (Hhp + 3 * Hp) + Hhp * Np + Hp * 3 * Hp)
    bytes_accessed = (sum(int(a.size) * a.dtype.itemsize for a in inputs)
                      + Bp * (Np + Hp) * 4)
    cost = pl.CostEstimate(flops=flops, transcendentals=3 * Bp * Hp,
                           bytes_accessed=bytes_accessed)

    def batch_spec(cols):
        return pl.BlockSpec((TB, cols), lambda i: (i, 0))

    def run(single_buffer_weights):
        def resident_spec(shape):
            if single_buffer_weights:
                # Constant index_map -> weights stay resident; single buffer.
                return pl.BlockSpec(shape, lambda i: (0, 0),
                                    pipeline_mode=pl.Buffered(1))
            return pl.BlockSpec(shape, lambda i: (0, 0))

        in_specs = ([batch_spec(Hp), batch_spec(Hp)]
                    + [resident_spec(w.shape) for w in weights])
        return pl.pallas_call(
            emotional_intelligence_kernel,
            out_shape=out_shapes,
            grid=(Bp // TB,),
            in_specs=in_specs,
            out_specs=out_specs,
            compiler_params=pltpu.CompilerParams(
                dimension_semantics=("parallel",),     # megacore over batch tiles
                vmem_limit_bytes=vmem_limit,
            ),
            cost_estimate=cost,
        )(*inputs)

    try:
        logits_p, emo_p = run(single_buffer_weights=hasattr(pl, "Buffered"))
    except Exception:
        # Fall back to default double-buffered specs if this JAX build rejects
        # pipeline_mode / Buffered(1).
        logits_p, emo_p = run(single_buffer_weights=False)

    return {
        "emotion_logits": logits_p[:B, :NUM_EMOTIONS],
        "emotion_state": emo_p[:B, :H],
    }


# -----------------------------------------------------------------------------
# Params + pure-JAX reference (mirrors the PyTorch module)
# -----------------------------------------------------------------------------
def init_params(key, hidden_dim):
    """Deterministic synthetic parameters. Linear weights stored as [in, out];
    GRU weights stored transposed (H, 3H) with gate order r|z|n; biases (1, X)."""
    H = hidden_dim
    ks = jax.random.split(key, 10)
    s = 0.1
    return {
        "enc_w":  s * jax.random.normal(ks[0], (H, H), jnp.float32),
        "enc_b":  s * jax.random.normal(ks[1], (1, H), jnp.float32),
        "det1_w": s * jax.random.normal(ks[2], (H, H // 2), jnp.float32),
        "det1_b": s * jax.random.normal(ks[3], (1, H // 2), jnp.float32),
        "det2_w": s * jax.random.normal(ks[4], (H // 2, NUM_EMOTIONS), jnp.float32),
        "det2_b": s * jax.random.normal(ks[5], (1, NUM_EMOTIONS), jnp.float32),
        "w_ih":   s * jax.random.normal(ks[6], (H, 3 * H), jnp.float32),
        "b_ih":   s * jax.random.normal(ks[7], (1, 3 * H), jnp.float32),
        "w_hh":   s * jax.random.normal(ks[8], (H, 3 * H), jnp.float32),
        "b_hh":   s * jax.random.normal(ks[9], (1, 3 * H), jnp.float32),
    }


def reference_forward(state, context, p):
    H = state.shape[1]
    emb = state @ p["enc_w"] + p["enc_b"]
    d1 = jnp.maximum(emb @ p["det1_w"] + p["det1_b"], 0.0)
    logits = d1 @ p["det2_w"] + p["det2_b"]

    gi = emb @ p["w_ih"] + p["b_ih"]
    gh = context @ p["w_hh"] + p["b_hh"]
    r = jax.nn.sigmoid(gi[:, 0:H] + gh[:, 0:H])
    z = jax.nn.sigmoid(gi[:, H:2 * H] + gh[:, H:2 * H])
    n = jnp.tanh(gi[:, 2 * H:3 * H] + r * gh[:, 2 * H:3 * H])
    new_h = (1.0 - z) * n + z * context
    return {"emotion_logits": logits, "emotion_state": new_h}


if __name__ == "__main__":
    B, H = 8, 32
    key = jax.random.PRNGKey(0)
    k_state, k_ctx, k_params = jax.random.split(key, 3)

    state = jax.random.normal(k_state, (B, H), jnp.float32)
    context = jax.random.normal(k_ctx, (B, H), jnp.float32)
    params = init_params(k_params, H)

    out = emotional_intelligence_forward(state, context, params)
    jax.block_until_ready(out)

    ref = reference_forward(state, context, params)
    assert out["emotion_logits"].shape == (B, NUM_EMOTIONS)
    assert out["emotion_state"].shape == (B, H)
    # bf16 weights with f32 MXU accumulation vs f32 reference -> loosened tolerance.
    assert jnp.allclose(out["emotion_logits"], ref["emotion_logits"], atol=2e-2, rtol=2e-2)
    assert jnp.allclose(out["emotion_state"], ref["emotion_state"], atol=2e-2, rtol=2e-2)

    print("KERNEL_OK")
</pallas_src>

<mosaic_0001>
module attributes {stable_mosaic.version = 11 : i64} {
  func.func @emotional_intelligence_kernel(%arg0: i32, %arg1: memref<8x128xf32, #tpu.memory_space<vmem>>, %arg2: memref<8x128xf32, #tpu.memory_space<vmem>>, %arg3: memref<128x128xbf16, #tpu.memory_space<vmem>>, %arg4: memref<1x128xf32, #tpu.memory_space<vmem>>, %arg5: memref<128x512xbf16, #tpu.memory_space<vmem>>, %arg6: memref<1x512xf32, #tpu.memory_space<vmem>>, %arg7: memref<128x128xbf16, #tpu.memory_space<vmem>>, %arg8: memref<1x128xf32, #tpu.memory_space<vmem>>, %arg9: memref<128x384xbf16, #tpu.memory_space<vmem>>, %arg10: memref<1x384xf32, #tpu.memory_space<vmem>>, %arg11: memref<8x128xf32, #tpu.memory_space<vmem>>, %arg12: memref<8x128xf32, #tpu.memory_space<vmem>>) attributes {dimension_semantics = [#tpu.dimension_semantics<parallel>], iteration_bounds = array<i64: 1>, scalar_prefetch = 0 : i64, scratch_operands = 0 : i64, tpu.core_type = #tpu.core_type<tc>, window_params = [{transform_indices = @transform_0, window_bounds = array<i64: 8, 128>}, {transform_indices = @transform_1, window_bounds = array<i64: 8, 128>}, {pipeline_mode = #tpu.pipeline_mode<synchronous>, transform_indices = @transform_2, window_bounds = array<i64: 128, 128>}, {pipeline_mode = #tpu.pipeline_mode<synchronous>, transform_indices = @transform_3, window_bounds = array<i64: 1, 128>}, {pipeline_mode = #tpu.pipeline_mode<synchronous>, transform_indices = @transform_4, window_bounds = array<i64: 128, 512>}, {pipeline_mode = #tpu.pipeline_mode<synchronous>, transform_indices = @transform_5, window_bounds = array<i64: 1, 512>}, {pipeline_mode = #tpu.pipeline_mode<synchronous>, transform_indices = @transform_6, window_bounds = array<i64: 128, 128>}, {pipeline_mode = #tpu.pipeline_mode<synchronous>, transform_indices = @transform_7, window_bounds = array<i64: 1, 128>}, {pipeline_mode = #tpu.pipeline_mode<synchronous>, transform_indices = @transform_8, window_bounds = array<i64: 128, 384>}, {pipeline_mode = #tpu.pipeline_mode<synchronous>, transform_indices = @transform_9, window_bounds = array<i64: 1, 384>}, {transform_indices = @transform_10, window_bounds = array<i64: 8, 128>}, {transform_indices = @transform_11, window_bounds = array<i64: 8, 128>}]} {
    %c0 = arith.constant 0 : index
    %c0_0 = arith.constant 0 : index
    %0 = vector.load %arg1[%c0, %c0_0] : memref<8x128xf32, #tpu.memory_space<vmem>>, vector<8x128xf32>
    %c0_1 = arith.constant 0 : index
    %c0_2 = arith.constant 0 : index
    %1 = vector.load %arg2[%c0_1, %c0_2] : memref<8x128xf32, #tpu.memory_space<vmem>>, vector<8x128xf32>
    %2 = arith.truncf %0 : vector<8x128xf32> to vector<8x128xbf16>
    %3 = arith.truncf %1 : vector<8x128xf32> to vector<8x128xbf16>
    %c0_3 = arith.constant 0 : index
    %c0_4 = arith.constant 0 : index
    %4 = vector.load %arg3[%c0_3, %c0_4] : memref<128x128xbf16, #tpu.memory_space<vmem>>, vector<128x128xbf16>
    %cst = arith.constant dense<0.000000e+00> : vector<8x128xf32>
    %5 = tpu.matmul %2, %4, %cst {dimension_numbers = #tpu.dot_dimension_numbers<[1], [0], [0], [1], [0, 0, 1, 1], [], []>} : vector<8x128xbf16>, vector<128x128xbf16>, vector<8x128xf32> -> vector<8x128xf32>
    %c0_5 = arith.constant 0 : index
    %c0_6 = arith.constant 0 : index
    %6 = vector.load %arg4[%c0_5, %c0_6] : memref<1x128xf32, #tpu.memory_space<vmem>>, vector<1x128xf32>
    %7 = vector.broadcast %6 : vector<1x128xf32> to vector<8x128xf32>
    %8 = arith.addf %5, %7 : vector<8x128xf32>
    %9 = arith.truncf %8 : vector<8x128xf32> to vector<8x128xbf16>
    %c0_7 = arith.constant 0 : index
    %c0_8 = arith.constant 0 : index
    %10 = vector.load %arg5[%c0_7, %c0_8] : memref<128x512xbf16, #tpu.memory_space<vmem>>, vector<128x512xbf16>
    %cst_9 = arith.constant dense<0.000000e+00> : vector<8x512xf32>
    %11 = tpu.matmul %9, %10, %cst_9 {dimension_numbers = #tpu.dot_dimension_numbers<[1], [0], [0], [1], [0, 0, 1, 1], [], []>} : vector<8x128xbf16>, vector<128x512xbf16>, vector<8x512xf32> -> vector<8x512xf32>
    %c0_10 = arith.constant 0 : index
    %c0_11 = arith.constant 0 : index
    %12 = vector.load %arg6[%c0_10, %c0_11] : memref<1x512xf32, #tpu.memory_space<vmem>>, vector<1x512xf32>
    %13 = vector.broadcast %12 : vector<1x512xf32> to vector<8x512xf32>
    %14 = arith.addf %11, %13 : vector<8x512xf32>
    %15 = vector.extract_strided_slice %14 {offsets = [0, 0], sizes = [8, 128], strides = [1, 1]} : vector<8x512xf32> to vector<8x128xf32>
    %cst_12 = arith.constant 0.000000e+00 : f32
    %16 = vector.broadcast %cst_12 : f32 to vector<8x128xf32>
    %17 = arith.maximumf %15, %16 : vector<8x128xf32>
    %18 = vector.extract_strided_slice %14 {offsets = [0, 128], sizes = [8, 384], strides = [1, 1]} : vector<8x512xf32> to vector<8x384xf32>
    %19 = arith.truncf %17 : vector<8x128xf32> to vector<8x128xbf16>
    %c0_13 = arith.constant 0 : index
    %c0_14 = arith.constant 0 : index
    %20 = vector.load %arg7[%c0_13, %c0_14] : memref<128x128xbf16, #tpu.memory_space<vmem>>, vector<128x128xbf16>
    %cst_15 = arith.constant dense<0.000000e+00> : vector<8x128xf32>
    %21 = tpu.matmul %19, %20, %cst_15 {dimension_numbers = #tpu.dot_dimension_numbers<[1], [0], [0], [1], [0, 0, 1, 1], [], []>} : vector<8x128xbf16>, vector<128x128xbf16>, vector<8x128xf32> -> vector<8x128xf32>
    %c0_16 = arith.constant 0 : index
    %c0_17 = arith.constant 0 : index
    %22 = vector.load %arg8[%c0_16, %c0_17] : memref<1x128xf32, #tpu.memory_space<vmem>>, vector<1x128xf32>
    %23 = vector.broadcast %22 : vector<1x128xf32> to vector<8x128xf32>
    %24 = arith.addf %21, %23 : vector<8x128xf32>
    %c0_18 = arith.constant 0 : index
    %c0_19 = arith.constant 0 : index
    %25 = vector.load %arg11[%c0_18, %c0_19] : memref<8x128xf32, #tpu.memory_space<vmem>>, vector<8x128xf32>
    tpu.vector_store %arg11[%c0_18, %c0_19], %24 {strides = array<i32>} : memref<8x128xf32, #tpu.memory_space<vmem>>, vector<8x128xf32>,
    %c0_20 = arith.constant 0 : index
    %c0_21 = arith.constant 0 : index
    %26 = vector.load %arg9[%c0_20, %c0_21] : memref<128x384xbf16, #tpu.memory_space<vmem>>, vector<128x384xbf16>
    %cst_22 = arith.constant dense<0.000000e+00> : vector<8x384xf32>
    %27 = tpu.matmul %3, %26, %cst_22 {dimension_numbers = #tpu.dot_dimension_numbers<[1], [0], [0], [1], [0, 0, 1, 1], [], []>} : vector<8x128xbf16>, vector<128x384xbf16>, vector<8x384xf32> -> vector<8x384xf32>
    %c0_23 = arith.constant 0 : index
    %c0_24 = arith.constant 0 : index
    %28 = vector.load %arg10[%c0_23, %c0_24] : memref<1x384xf32, #tpu.memory_space<vmem>>, vector<1x384xf32>
    %29 = vector.broadcast %28 : vector<1x384xf32> to vector<8x384xf32>
    %30 = arith.addf %27, %29 : vector<8x384xf32>
    %31 = vector.extract_strided_slice %18 {offsets = [0, 0], sizes = [8, 128], strides = [1, 1]} : vector<8x384xf32> to vector<8x128xf32>
    %32 = vector.extract_strided_slice %18 {offsets = [0, 128], sizes = [8, 128], strides = [1, 1]} : vector<8x384xf32> to vector<8x128xf32>
    %33 = vector.extract_strided_slice %18 {offsets = [0, 256], sizes = [8, 128], strides = [1, 1]} : vector<8x384xf32> to vector<8x128xf32>
    %34 = vector.extract_strided_slice %30 {offsets = [0, 0], sizes = [8, 128], strides = [1, 1]} : vector<8x384xf32> to vector<8x128xf32>
    %35 = vector.extract_strided_slice %30 {offsets = [0, 128], sizes = [8, 128], strides = [1, 1]} : vector<8x384xf32> to vector<8x128xf32>
    %36 = vector.extract_strided_slice %30 {offsets = [0, 256], sizes = [8, 128], strides = [1, 1]} : vector<8x384xf32> to vector<8x128xf32>
    %37 = arith.addf %31, %34 : vector<8x128xf32>
    %38 = arith.negf %37 : vector<8x128xf32>
    %39 = math.exp %38 : vector<8x128xf32>
    %cst_25 = arith.constant 1.000000e+00 : f32
    %40 = vector.broadcast %cst_25 : f32 to vector<8x128xf32>
    %41 = arith.addf %40, %39 : vector<8x128xf32>
    %42 = arith.divf %40, %41 : vector<8x128xf32>
    %43 = arith.addf %32, %35 : vector<8x128xf32>
    %44 = arith.negf %43 : vector<8x128xf32>
    %45 = math.exp %44 : vector<8x128xf32>
    %cst_26 = arith.constant 1.000000e+00 : f32
    %46 = vector.broadcast %cst_26 : f32 to vector<8x128xf32>
    %47 = arith.addf %46, %45 : vector<8x128xf32>
    %48 = arith.divf %46, %47 : vector<8x128xf32>
    %49 = arith.mulf %42, %36 : vector<8x128xf32>
    %50 = arith.addf %33, %49 : vector<8x128xf32>
    %51 = math.tanh %50 : vector<8x128xf32>
    %cst_27 = arith.constant 1.000000e+00 : f32
    %52 = vector.broadcast %cst_27 : f32 to vector<8x128xf32>
    %53 = arith.subf %52, %48 : vector<8x128xf32>
    %54 = arith.mulf %53, %51 : vector<8x128xf32>
    %55 = arith.mulf %48, %1 : vector<8x128xf32>
    %56 = arith.addf %54, %55 : vector<8x128xf32>
    %c0_28 = arith.constant 0 : index
    %c0_29 = arith.constant 0 : index
    %57 = vector.load %arg12[%c0_28, %c0_29] : memref<8x128xf32, #tpu.memory_space<vmem>>, vector<8x128xf32>
    tpu.vector_store %arg12[%c0_28, %c0_29], %56 {strides = array<i32>} : memref<8x128xf32, #tpu.memory_space<vmem>>, vector<8x128xf32>,
    return
  }
  func.func @transform_0(%arg0: i32) -> (i32, i32) {
    %c0_i32 = arith.constant 0 : i32
    %c0_i32_0 = arith.constant 0 : i32
    return %arg0, %c0_i32 : i32, i32
  }
  func.func @transform_1(%arg0: i32) -> (i32, i32) {
    %c0_i32 = arith.constant 0 : i32
    %c0_i32_0 = arith.constant 0 : i32
    return %arg0, %c0_i32 : i32, i32
  }
  func.func @transform_2(%arg0: i32) -> (i32, i32) {
    %c0_i32 = arith.constant 0 : i32
    %c0_i32_0 = arith.constant 0 : i32
    %c0_i32_1 = arith.constant 0 : i32
    return %c0_i32, %c0_i32_0 : i32, i32
  }
  func.func @transform_3(%arg0: i32) -> (i32, i32) {
    %c0_i32 = arith.constant 0 : i32
    %c0_i32_0 = arith.constant 0 : i32
    %c0_i32_1 = arith.constant 0 : i32
    return %c0_i32, %c0_i32_0 : i32, i32
  }
  func.func @transform_4(%arg0: i32) -> (i32, i32) {
    %c0_i32 = arith.constant 0 : i32
    %c0_i32_0 = arith.constant 0 : i32
    %c0_i32_1 = arith.constant 0 : i32
    return %c0_i32, %c0_i32_0 : i32, i32
  }
  func.func @transform_5(%arg0: i32) -> (i32, i32) {
    %c0_i32 = arith.constant 0 : i32
    %c0_i32_0 = arith.constant 0 : i32
    %c0_i32_1 = arith.constant 0 : i32
    return %c0_i32, %c0_i32_0 : i32, i32
  }
  func.func @transform_6(%arg0: i32) -> (i32, i32) {
    %c0_i32 = arith.constant 0 : i32
    %c0_i32_0 = arith.constant 0 : i32
    %c0_i32_1 = arith.constant 0 : i32
    return %c0_i32, %c0_i32_0 : i32, i32
  }
  func.func @transform_7(%arg0: i32) -> (i32, i32) {
    %c0_i32 = arith.constant 0 : i32
    %c0_i32_0 = arith.constant 0 : i32
    %c0_i32_1 = arith.constant 0 : i32
    return %c0_i32, %c0_i32_0 : i32, i32
  }
  func.func @transform_8(%arg0: i32) -> (i32, i32) {
    %c0_i32 = arith.constant 0 : i32
    %c0_i32_0 = arith.constant 0 : i32
    %c0_i32_1 = arith.constant 0 : i32
    return %c0_i32, %c0_i32_0 : i32, i32
  }
  func.func @transform_9(%arg0: i32) -> (i32, i32) {
    %c0_i32 = arith.constant 0 : i32
    %c0_i32_0 = arith.constant 0 : i32
    %c0_i32_1 = arith.constant 0 : i32
    return %c0_i32, %c0_i32_0 : i32, i32
  }
  func.func @transform_10(%arg0: i32) -> (i32, i32) {
    %c0_i32 = arith.constant 0 : i32
    %c0_i32_0 = arith.constant 0 : i32
    return %arg0, %c0_i32 : i32, i32
  }
  func.func @transform_11(%arg0: i32) -> (i32, i32) {
    %c0_i32 = arith.constant 0 : i32
    %c0_i32_0 = arith.constant 0 : i32
    return %arg0, %c0_i32 : i32, i32
  }
}

module attributes {stable_mosaic.version = 11 : i64} {
  func.func @emotional_intelligence_kernel(%arg0: i32, %arg1: memref<8x128xf32, #tpu.memory_space<vmem>>, %arg2: memref<8x128xf32, #tpu.memory_space<vmem>>, %arg3: memref<128x128xbf16, #tpu.memory_space<vmem>>, %arg4: memref<1x128xf32, #tpu.memory_space<vmem>>, %arg5: memref<128x512xbf16, #tpu.memory_space<vmem>>, %arg6: memref<1x512xf32, #tpu.memory_space<vmem>>, %arg7: memref<128x128xbf16, #tpu.memory_space<vmem>>, %arg8: memref<1x128xf32, #tpu.memory_space<vmem>>, %arg9: memref<128x384xbf16, #tpu.memory_space<vmem>>, %arg10: memref<1x384xf32, #tpu.memory_space<vmem>>, %arg11: memref<8x128xf32, #tpu.memory_space<vmem>>, %arg12: memref<8x128xf32, #tpu.memory_space<vmem>>) attributes {dimension_semantics = [#tpu.dimension_semantics<parallel>], iteration_bounds = array<i64: 1>, scalar_prefetch = 0 : i64, scratch_operands = 0 : i64, tpu.core_type = #tpu.core_type<tc>, window_params = [{transform_indices = @transform_0, window_bounds = array<i64: 8, 128>}, {transform_indices = @transform_1, window_bounds = array<i64: 8, 128>}, {pipeline_mode = #tpu.pipeline_mode<synchronous>, transform_indices = @transform_2, window_bounds = array<i64: 128, 128>}, {pipeline_mode = #tpu.pipeline_mode<synchronous>, transform_indices = @transform_3, window_bounds = array<i64: 1, 128>}, {pipeline_mode = #tpu.pipeline_mode<synchronous>, transform_indices = @transform_4, window_bounds = array<i64: 128, 512>}, {pipeline_mode = #tpu.pipeline_mode<synchronous>, transform_indices = @transform_5, window_bounds = array<i64: 1, 512>}, {pipeline_mode = #tpu.pipeline_mode<synchronous>, transform_indices = @transform_6, window_bounds = array<i64: 128, 128>}, {pipeline_mode = #tpu.pipeline_mode<synchronous>, transform_indices = @transform_7, window_bounds = array<i64: 1, 128>}, {pipeline_mode = #tpu.pipeline_mode<synchronous>, transform_indices = @transform_8, window_bounds = array<i64: 128, 384>}, {pipeline_mode = #tpu.pipeline_mode<synchronous>, transform_indices = @transform_9, window_bounds = array<i64: 1, 384>}, {transform_indices = @transform_10, window_bounds = array<i64: 8, 128>}, {transform_indices = @transform_11, window_bounds = array<i64: 8, 128>}]} {
    %c0 = arith.constant 0 : index
    %c0_0 = arith.constant 0 : index
    %0 = vector.load %arg1[%c0, %c0_0] : memref<8x128xf32, #tpu.memory_space<vmem>>, vector<8x128xf32>
    %c0_1 = arith.constant 0 : index
    %c0_2 = arith.constant 0 : index
    %1 = vector.load %arg2[%c0_1, %c0_2] : memref<8x128xf32, #tpu.memory_space<vmem>>, vector<8x128xf32>
    %2 = arith.truncf %0 : vector<8x128xf32> to vector<8x128xbf16>
    %3 = arith.truncf %1 : vector<8x128xf32> to vector<8x128xbf16>
    %c0_3 = arith.constant 0 : index
    %c0_4 = arith.constant 0 : index
    %4 = vector.load %arg3[%c0_3, %c0_4] : memref<128x128xbf16, #tpu.memory_space<vmem>>, vector<128x128xbf16>
    %cst = arith.constant dense<0.000000e+00> : vector<8x128xf32>
    %5 = tpu.matmul %2, %4, %cst {dimension_numbers = #tpu.dot_dimension_numbers<[1], [0], [0], [1], [0, 0, 1, 1], [], []>} : vector<8x128xbf16>, vector<128x128xbf16>, vector<8x128xf32> -> vector<8x128xf32>
    %c0_5 = arith.constant 0 : index
    %c0_6 = arith.constant 0 : index
    %6 = vector.load %arg4[%c0_5, %c0_6] : memref<1x128xf32, #tpu.memory_space<vmem>>, vector<1x128xf32>
    %7 = vector.broadcast %6 : vector<1x128xf32> to vector<8x128xf32>
    %8 = arith.addf %5, %7 : vector<8x128xf32>
    %9 = arith.truncf %8 : vector<8x128xf32> to vector<8x128xbf16>
    %c0_7 = arith.constant 0 : index
    %c0_8 = arith.constant 0 : index
    %10 = vector.load %arg5[%c0_7, %c0_8] : memref<128x512xbf16, #tpu.memory_space<vmem>>, vector<128x512xbf16>
    %cst_9 = arith.constant dense<0.000000e+00> : vector<8x512xf32>
    %11 = tpu.matmul %9, %10, %cst_9 {dimension_numbers = #tpu.dot_dimension_numbers<[1], [0], [0], [1], [0, 0, 1, 1], [], []>} : vector<8x128xbf16>, vector<128x512xbf16>, vector<8x512xf32> -> vector<8x512xf32>
    %c0_10 = arith.constant 0 : index
    %c0_11 = arith.constant 0 : index
    %12 = vector.load %arg6[%c0_10, %c0_11] : memref<1x512xf32, #tpu.memory_space<vmem>>, vector<1x512xf32>
    %13 = vector.broadcast %12 : vector<1x512xf32> to vector<8x512xf32>
    %14 = arith.addf %11, %13 : vector<8x512xf32>
    %15 = vector.extract_strided_slice %14 {offsets = [0, 0], sizes = [8, 128], strides = [1, 1]} : vector<8x512xf32> to vector<8x128xf32>
    %cst_12 = arith.constant 0.000000e+00 : f32
    %16 = vector.broadcast %cst_12 : f32 to vector<8x128xf32>
    %17 = arith.maximumf %15, %16 : vector<8x128xf32>
    %18 = vector.extract_strided_slice %14 {offsets = [0, 128], sizes = [8, 384], strides = [1, 1]} : vector<8x512xf32> to vector<8x384xf32>
    %19 = arith.truncf %17 : vector<8x128xf32> to vector<8x128xbf16>
    %c0_13 = arith.constant 0 : index
    %c0_14 = arith.constant 0 : index
    %20 = vector.load %arg7[%c0_13, %c0_14] : memref<128x128xbf16, #tpu.memory_space<vmem>>, vector<128x128xbf16>
    %cst_15 = arith.constant dense<0.000000e+00> : vector<8x128xf32>
    %21 = tpu.matmul %19, %20, %cst_15 {dimension_numbers = #tpu.dot_dimension_numbers<[1], [0], [0], [1], [0, 0, 1, 1], [], []>} : vector<8x128xbf16>, vector<128x128xbf16>, vector<8x128xf32> -> vector<8x128xf32>
    %c0_16 = arith.constant 0 : index
    %c0_17 = arith.constant 0 : index
    %22 = vector.load %arg8[%c0_16, %c0_17] : memref<1x128xf32, #tpu.memory_space<vmem>>, vector<1x128xf32>
    %23 = vector.broadcast %22 : vector<1x128xf32> to vector<8x128xf32>
    %24 = arith.addf %21, %23 : vector<8x128xf32>
    %c0_18 = arith.constant 0 : index
    %c0_19 = arith.constant 0 : index
    %25 = vector.load %arg11[%c0_18, %c0_19] : memref<8x128xf32, #tpu.memory_space<vmem>>, vector<8x128xf32>
    tpu.vector_store %arg11[%c0_18, %c0_19], %24 {strides = array<i32>} : memref<8x128xf32, #tpu.memory_space<vmem>>, vector<8x128xf32>,
    %c0_20 = arith.constant 0 : index
    %c0_21 = arith.constant 0 : index
    %26 = vector.load %arg9[%c0_20, %c0_21] : memref<128x384xbf16, #tpu.memory_space<vmem>>, vector<128x384xbf16>
    %cst_22 = arith.constant dense<0.000000e+00> : vector<8x384xf32>
    %27 = tpu.matmul %3, %26, %cst_22 {dimension_numbers = #tpu.dot_dimension_numbers<[1], [0], [0], [1], [0, 0, 1, 1], [], []>} : vector<8x128xbf16>, vector<128x384xbf16>, vector<8x384xf32> -> vector<8x384xf32>
    %c0_23 = arith.constant 0 : index
    %c0_24 = arith.constant 0 : index
    %28 = vector.load %arg10[%c0_23, %c0_24] : memref<1x384xf32, #tpu.memory_space<vmem>>, vector<1x384xf32>
    %29 = vector.broadcast %28 : vector<1x384xf32> to vector<8x384xf32>
    %30 = arith.addf %27, %29 : vector<8x384xf32>
    %31 = vector.extract_strided_slice %18 {offsets = [0, 0], sizes = [8, 128], strides = [1, 1]} : vector<8x384xf32> to vector<8x128xf32>
    %32 = vector.extract_strided_slice %18 {offsets = [0, 128], sizes = [8, 128], strides = [1, 1]} : vector<8x384xf32> to vector<8x128xf32>
    %33 = vector.extract_strided_slice %18 {offsets = [0, 256], sizes = [8, 128], strides = [1, 1]} : vector<8x384xf32> to vector<8x128xf32>
    %34 = vector.extract_strided_slice %30 {offsets = [0, 0], sizes = [8, 128], strides = [1, 1]} : vector<8x384xf32> to vector<8x128xf32>
    %35 = vector.extract_strided_slice %30 {offsets = [0, 128], sizes = [8, 128], strides = [1, 1]} : vector<8x384xf32> to vector<8x128xf32>
    %36 = vector.extract_strided_slice %30 {offsets = [0, 256], sizes = [8, 128], strides = [1, 1]} : vector<8x384xf32> to vector<8x128xf32>
    %37 = arith.addf %31, %34 : vector<8x128xf32>
    %38 = arith.negf %37 : vector<8x128xf32>
    %39 = math.exp %38 : vector<8x128xf32>
    %cst_25 = arith.constant 1.000000e+00 : f32
    %40 = vector.broadcast %cst_25 : f32 to vector<8x128xf32>
    %41 = arith.addf %40, %39 : vector<8x128xf32>
    %42 = arith.divf %40, %41 : vector<8x128xf32>
    %43 = arith.addf %32, %35 : vector<8x128xf32>
    %44 = arith.negf %43 : vector<8x128xf32>
    %45 = math.exp %44 : vector<8x128xf32>
    %cst_26 = arith.constant 1.000000e+00 : f32
    %46 = vector.broadcast %cst_26 : f32 to vector<8x128xf32>
    %47 = arith.addf %46, %45 : vector<8x128xf32>
    %48 = arith.divf %46, %47 : vector<8x128xf32>
    %49 = arith.mulf %42, %36 : vector<8x128xf32>
    %50 = arith.addf %33, %49 : vector<8x128xf32>
    %51 = math.tanh %50 : vector<8x128xf32>
    %cst_27 = arith.constant 1.000000e+00 : f32
    %52 = vector.broadcast %cst_27 : f32 to vector<8x128xf32>
    %53 = arith.subf %52, %48 : vector<8x128xf32>
    %54 = arith.mulf %53, %51 : vector<8x128xf32>
    %55 = arith.mulf %48, %1 : vector<8x128xf32>
    %56 = arith.addf %54, %55 : vector<8x128xf32>
    %c0_28 = arith.constant 0 : index
    %c0_29 = arith.constant 0 : index
    %57 = vector.load %arg12[%c0_28, %c0_29] : memref<8x128xf32, #tpu.memory_space<vmem>>, vector<8x128xf32>
    tpu.vector_store %arg12[%c0_28, %c0_29], %56 {strides = array<i32>} : memref<8x128xf32, #tpu.memory_space<vmem>>, vector<8x128xf32>,
    return
  }
  func.func @transform_0(%arg0: i32) -> (i32, i32) {
    %c0_i32 = arith.constant 0 : i32
    %c0_i32_0 = arith.constant 0 : i32
    return %arg0, %c0_i32 : i32, i32
  }
  func.func @transform_1(%arg0: i32) -> (i32, i32) {
    %c0_i32 = arith.constant 0 : i32
    %c0_i32_0 = arith.constant 0 : i32
    return %arg0, %c0_i32 : i32, i32
  }
  func.func @transform_2(%arg0: i32) -> (i32, i32) {
    %c0_i32 = arith.constant 0 : i32
    %c0_i32_0 = arith.constant 0 : i32
    %c0_i32_1 = arith.constant 0 : i32
    return %c0_i32, %c0_i32_0 : i32, i32
  }
  func.func @transform_3(%arg0: i32) -> (i32, i32) {
    %c0_i32 = arith.constant 0 : i32
    %c0_i32_0 = arith.constant 0 : i32
    %c0_i32_1 = arith.constant 0 : i32
    return %c0_i32, %c0_i32_0 : i32, i32
  }
  func.func @transform_4(%arg0: i32) -> (i32, i32) {
    %c0_i32 = arith.constant 0 : i32
    %c0_i32_0 = arith.constant 0 : i32
    %c0_i32_1 = arith.constant 0 : i32
    return %c0_i32, %c0_i32_0 : i32, i32
  }
  func.func @transform_5(%arg0: i32) -> (i32, i32) {
    %c0_i32 = arith.constant 0 : i32
    %c0_i32_0 = arith.constant 0 : i32
    %c0_i32_1 = arith.constant 0 : i32
    return %c0_i32, %c0_i32_0 : i32, i32
  }
  func.func @transform_6(%arg0: i32) -> (i32, i32) {
    %c0_i32 = arith.constant 0 : i32
    %c0_i32_0 = arith.constant 0 : i32
    %c0_i32_1 = arith.constant 0 : i32
    return %c0_i32, %c0_i32_0 : i32, i32
  }
  func.func @transform_7(%arg0: i32) -> (i32, i32) {
    %c0_i32 = arith.constant 0 : i32
    %c0_i32_0 = arith.constant 0 : i32
    %c0_i32_1 = arith.constant 0 : i32
    return %c0_i32, %c0_i32_0 : i32, i32
  }
  func.func @transform_8(%arg0: i32) -> (i32, i32) {
    %c0_i32 = arith.constant 0 : i32
    %c0_i32_0 = arith.constant 0 : i32
    %c0_i32_1 = arith.constant 0 : i32
    return %c0_i32, %c0_i32_0 : i32, i32
  }
  func.func @transform_9(%arg0: i32) -> (i32, i32) {
    %c0_i32 = arith.constant 0 : i32
    %c0_i32_0 = arith.constant 0 : i32
    %c0_i32_1 = arith.constant 0 : i32
    return %c0_i32, %c0_i32_0 : i32, i32
  }
  func.func @transform_10(%arg0: i32) -> (i32, i32) {
    %c0_i32 = arith.constant 0 : i32
    %c0_i32_0 = arith.constant 0 : i32
    return %arg0, %c0_i32 : i32, i32
  }
  func.func @transform_11(%arg0: i32) -> (i32, i32) {
    %c0_i32 = arith.constant 0 : i32
    %c0_i32_0 = arith.constant 0 : i32
    return %arg0, %c0_i32 : i32, i32
  }
}

</mosaic_0001>

<bundles_post_ra>
// kernel: tpu_custom_call.1
= control target key start
LH: loop header
LB: loop body
LE: loop exit
PB: predicated region body
PF: predicated region fallthrough
CT: control target
= control target key end

     0   :  { %17 = vsyncpa [#allocation3], 0  ;;  %s1614_s0 = inlined_call_operand.hbm [shape: f32[8,128], index: 0, kind: input, shape index: {}]   ;;  %s1615_s1 = inlined_call_operand.hbm [shape: f32[8,128], index: 1, kind: input, shape index: {}]   ;;  %s1616_s2 = inlined_call_operand.hbm [shape: bf16[128,128], index: 2, kind: input, shape index: {}]   ;;  %s1617_s3 = inlined_call_operand.hbm [shape: f32[1,128], index: 3, kind: input, shape index: {}]   ;;  %s1618_s4 = inlined_call_operand.hbm [shape: bf16[128,512], index: 4, kind: input, shape index: {}]   ;;  %s1619_s5 = inlined_call_operand.vmem [shape: f32[1,512], index: 5, kind: input, shape index: {}]   ;;  %s1620_s6 = inlined_call_operand.hbm [shape: bf16[128,128], index: 6, kind: input, shape index: {}]   ;;  %s1621_s7 = inlined_call_operand.vmem [shape: f32[1,128], index: 7, kind: input, shape index: {}]   ;;  %s1622_s8 = inlined_call_operand.hbm [shape: bf16[128,384], index: 8, kind: input, shape index: {}]   ;;  %s1623_s9 = inlined_call_operand.vmem [shape: f32[1,384], index: 9, kind: input, shape index: {}]   ;;  %s1624_s10 = inlined_call_operand.hbm [shape: f32[8,128], index: 10, kind: output, shape index: {0}]   ;;  %s1625_s11 = inlined_call_operand.hbm [shape: f32[8,128], index: 11, kind: output, shape index: {1}]  }
   0x1   :  { %18 = vsyncpa [#allocation6], 0 }
   0x2   :  { %19 = vsyncpa [#allocation9], 0 }
   0x3   :  { %20 = vsyncpa [#allocation12], 0 }
   0x4   :  { %21 = vsyncpa [#allocation4], 0 }
   0x5   :  { %22 = vsyncpa [#allocation16], 0  ;;  %s1446_s17 = smov [#allocation5]   ;;  %s1447_s19 = smov [#allocation8]  }
   0x6   :  { %s39_s18 = sshll.u32 %s1446_s17, 4  ;;  %s61_s20 = sshll.u32 %s1447_s19, 4  ;;  %s40_s18 = int_to_ptr.vmem [resolvable:$true] %s39_s18  ;;  %s62_s20 = int_to_ptr.vmem [resolvable:$true] %s61_s20 }
   0x7   :  { %s1262_s21 = scalar_lea.vmem %s40_s18, 128  ;;  %p1267_p1 = scmp.lt.s32.totalorder %s40_s18, %s40_s18 }
   0x8   :  { %p1263_p0 = scmp.ne.s32.totalorder %s40_s18, %s1262_s21  ;;  %p1268_p2 = scmp.lt.s32.totalorder %s1262_s21, %s1262_s21 }
   0xa   :  { %p1269_p3 = por %p1268_p2, %p1267_p1 }
   0xc   :  { %p1270_p4 = pnand %p1269_p3, %p1263_p0 }
   0xe   :  { %1273 = shalt.err (!%p1270_p4)
}
   0xf   :  { %42 = dma.hbm_to_vmem [thread:$0]  %s1615_s1, 128, %s40_s18, [#allocation6]  }
  0x10   :  { %s1282_s24 = scalar_lea.vmem %s62_s20, 16  ;;  %s1286_s25 = scalar_lea.vmem %s62_s20, 32 }
  0x11   :  { %p1283_p5 = scmp.ne.s32.totalorder %s62_s20, %s1282_s24  ;;  %p1287_p6 = scmp.lt.s32.totalorder %s62_s20, %s62_s20 }
  0x12   :  { %p1288_p7 = scmp.lt.s32.totalorder %s1286_s25, %s1282_s24 }
  0x14   :  { %p1289_p8 = por %p1288_p7, %p1287_p6 }
  0x16   :  { %p1290_p9 = pnand %p1289_p8, %p1283_p5 }
  0x18   :  { %1293 = shalt.err (!%p1290_p9)
}
  0x19   :  { %64 = dma.hbm_to_vmem [thread:$0]  %s1617_s3, 16, %s62_s20, [#allocation9]  }
  0x1a   :  { %s1448_s28 = smov [#allocation11]   ;;  %s1449_s30 = smov [#allocation2]  }
  0x1b   :  { %s84_s29 = sshll.u32 %s1448_s28, 4  ;;  %s29_s12 = sshll.u32 %s1449_s30, 4  ;;  %s85_s29 = int_to_ptr.vmem [resolvable:$true] %s84_s29  ;;  %s30_s12 = int_to_ptr.vmem [resolvable:$true] %s29_s12 }
  0x1c   :  { %s1302_s13 = scalar_lea.vmem %s85_s29, 1024  ;;  %p1307_p11 = scmp.lt.s32.totalorder %s85_s29, %s85_s29 }
  0x1d   :  { %p1303_p10 = scmp.ne.s32.totalorder %s85_s29, %s1302_s13  ;;  %p1308_p12 = scmp.lt.s32.totalorder %s1302_s13, %s1302_s13 }
  0x1f   :  { %p1309_p13 = por %p1308_p12, %p1307_p11 }
  0x21   :  { %p1310_p0 = pnand %p1309_p13, %p1303_p10 }
  0x23   :  { %1313 = shalt.err (!%p1310_p0)
}
  0x24   :  { %s1450_s1 = smov 64   ;;  %s1451_s14 = smov 4  }
  0x25   :  { %90 = dma.hbm_to_vmem [thread:$0]  %s1620_s6, 1024, %s85_s29, [#allocation12], %s1450_s1, %s1450_s1, %s1451_s14  }
  0x26   :  { %s1322_s3 = scalar_lea.vmem %s30_s12, 128  ;;  %p1327_p2 = scmp.lt.s32.totalorder %s30_s12, %s30_s12 }
  0x27   :  { %p1323_p1 = scmp.ne.s32.totalorder %s30_s12, %s1322_s3  ;;  %p1328_p3 = scmp.lt.s32.totalorder %s1322_s3, %s1322_s3 }
  0x29   :  { %p1329_p4 = por %p1328_p3, %p1327_p2 }
  0x2b   :  { %p1330_p5 = pnand %p1329_p4, %p1323_p1 }
  0x2d   :  { %1333 = shalt.err (!%p1330_p5)
}
  0x2e   :  { %32 = dma.hbm_to_vmem [thread:$0]  %s1614_s0, 128, %s30_s12, [#allocation3]  }
  0x2f   :  { %s1452_s19 = smov [#allocation7]   ;;  %s1453_s21 = smov [#allocation10]  }
  0x30   :  { %s48_s20 = sshll.u32 %s1452_s19, 4  ;;  %s70_s22 = sshll.u32 %s1453_s21, 4  ;;  %s49_s20 = int_to_ptr.vmem [resolvable:$true] %s48_s20  ;;  %s71_s22 = int_to_ptr.vmem [resolvable:$true] %s70_s22 }
  0x31   :  { %s1342_s23 = scalar_lea.vmem %s49_s20, 1024  ;;  %p1347_p7 = scmp.lt.s32.totalorder %s49_s20, %s49_s20 }
  0x32   :  { %p1343_p6 = scmp.ne.s32.totalorder %s49_s20, %s1342_s23  ;;  %p1348_p8 = scmp.lt.s32.totalorder %s1342_s23, %s1342_s23 }
  0x34   :  { %p1349_p9 = por %p1348_p8, %p1347_p7 }
  0x36   :  { %p1350_p10 = pnand %p1349_p9, %p1343_p6 }
  0x38   :  { %1353 = shalt.err (!%p1350_p10)
}
  0x39   :  { %54 = dma.hbm_to_vmem [thread:$0]  %s1616_s2, 1024, %s49_s20, [#allocation6], %s1450_s1, %s1450_s1, %s1451_s14  }
  0x3a   :  { %s1362_s25 = scalar_lea.vmem %s71_s22, 4096  ;;  %p1367_p12 = scmp.lt.s32.totalorder %s71_s22, %s71_s22 }
  0x3b   :  { %p1363_p11 = scmp.ne.s32.totalorder %s71_s22, %s1362_s25  ;;  %p1368_p13 = scmp.lt.s32.totalorder %s1362_s25, %s1362_s25 }
  0x3d   :  { %p1369_p0 = por %p1368_p13, %p1367_p12 }
  0x3f   :  { %p1370_p1 = pnand %p1369_p0, %p1363_p11 }
  0x41   :  { %1373 = shalt.err (!%p1370_p1)
}
  0x42   :  { %s1454_s0 = smov 256   ;;  %s1455_s26 = smov 16  }
  0x43   :  { %76 = dma.hbm_to_vmem [thread:$0]  %s1618_s4, 4096, %s71_s22, [#allocation9], %s1454_s0, %s1454_s0, %s1455_s26  }
  0x44   :  { %s1456_s29 = smov [#allocation13]  }
  0x45   :  { %s98_s30 = sshll.u32 %s1456_s29, 4  ;;  %s99_s30 = int_to_ptr.vmem [resolvable:$true] %s98_s30 }
  0x46   :  { %s1382_s12 = scalar_lea.vmem %s99_s30, 3072  ;;  %p1387_p3 = scmp.lt.s32.totalorder %s99_s30, %s99_s30 }
  0x47   :  { %p1383_p2 = scmp.ne.s32.totalorder %s99_s30, %s1382_s12  ;;  %p1388_p4 = scmp.lt.s32.totalorder %s1382_s12, %s1382_s12 }
  0x49   :  { %p1389_p5 = por %p1388_p4, %p1387_p3 }
  0x4b   :  { %p1390_p6 = pnand %p1389_p5, %p1383_p2 }
  0x4d   :  { %1393 = shalt.err (!%p1390_p6)
}
  0x4e   :  { %s1457_s2 = smov 192   ;;  %s1458_s13 = smov 12  }
  0x4f   :  { %104 = dma.hbm_to_vmem [thread:$0]  %s1622_s8, 3072, %s99_s30, [#allocation12], %s1457_s2, %s1457_s2, %s1458_s13  }
  0x50   :  { %1434 = dma.done.wait [#allocation3], 128  }
  0x51   :  { %1435 = vsyncadd [#allocation3], 4294967168 }
  0x52   :  { %1436 = dma.done.wait [#allocation6], 1152  }
  0x53   :  { %1437 = vsyncadd [#allocation6], 4294966144 }
  0x54   :  { %1438 = dma.done.wait [#allocation9], 4112  }
  0x55   :  { %1439 = vsyncadd [#allocation9], 4294963184 }
  0x56   :  { %1440 = dma.done.wait [#allocation12], 4096  }
  0x57   :  { %1441 = vsyncadd [#allocation12], 4294963200  ;;  %v1459_v0 = vmov 0.0   ;;  %vm1460_vm0 = vmmov 0   ;;  %v1148_v1 = vld [vmem:[#allocation7 + $0x38] sm:$0xff]   ;;  %v1149_v2 = vld [vmem:[#allocation7 + $0x30] sm:$0xff]  }
  0x58   :  { %1070 = vmatprep.subr.bf16.mxu0 %v1459_v0  ;;  %1086 = vmatprep.mubr.msk.bf16.mxu0 %vm1460_vm0, %v1459_v0  ;;  %v1150_v3 = vld [vmem:[#allocation7 + $0x28] sm:$0xff]   ;;  %v1151_v4 = vld [vmem:[#allocation7 + $0x20] sm:$0xff]   ;;  %v1152_v9 = vld [vmem:[#allocation7 + $0x18] sm:$0xff]   ;;  %v1461_v44 = vmov 0   ;;  %s1462_s3 = smov [#allocation14]  }
  0x59   :  { %1071 = vmatpush3.bf16.msra.mxu0 %v1148_v1  ;;  %v1159_v5 = vld [vmem:[#allocation10 + $0xe4] ss:$16 sps:$4 sm:$0xff]   ;;  %v1161_v6 = vld [vmem:[#allocation10 + $0xe0] ss:$16 sps:$4 sm:$0xff]   ;;  %v1158_v20 = vld [vmem:[#allocation10 + $0xec] ss:$16 sps:$4 sm:$0xff]   ;;  %491 = vmatprep.mubr.bf16.mxu1 %v1461_v44 }
  0x5a   :  { %1072 = vmatprep.subr.bf16.mxu0 %v1459_v0  ;;  %459 = vmatprep.subr.bf16.mxu1 %v1159_v5  ;;  %v1165_v7 = vld [vmem:[#allocation10 + $0xc4] ss:$16 sps:$4 sm:$0xff]   ;;  %v1167_v8 = vld [vmem:[#allocation10 + $0xc0] ss:$16 sps:$4 sm:$0xff]   ;;  %v1156_v23 = vld [vmem:[#allocation10 + $0xe8] ss:$16 sps:$4 sm:$0xff]  }
  0x5b   :  { %460 = vmatpush1.bf16.msra.mxu1 %v1161_v6  ;;  %v1171_v10 = vld [vmem:[#allocation10 + $0xa4] ss:$16 sps:$4 sm:$0xff]   ;;  %v1173_v11 = vld [vmem:[#allocation10 + $0xa0] ss:$16 sps:$4 sm:$0xff]   ;;  %v1164_v26 = vld [vmem:[#allocation10 + $0xcc] ss:$16 sps:$4 sm:$0xff]  }
  0x5c   :  { %461 = vmatprep.subr.bf16.mxu1 %v1165_v7  ;;  %v1153_v12 = vld [vmem:[#allocation7 + $0x10] sm:$0xff]   ;;  %v1154_v15 = vld [vmem:[#allocation7 + $0x8] sm:$0xff]   ;;  %v1155_v17 = vld [vmem:[#allocation7] sm:$0xff]   ;;  %s941_s17 = sshll.u32 %s1462_s3, 4  ;;  %s942_s17 = int_to_ptr.vmem [resolvable:$true] %s941_s17 }
  0x5d   :  { %1073 = vmatpush3.bf16.msra.mxu0 %v1149_v2  ;;  %v1177_v13 = vld [vmem:[#allocation10 + $0x84] ss:$16 sps:$4 sm:$0xff]   ;;  %v1179_v14 = vld [vmem:[#allocation10 + $0x80] ss:$16 sps:$4 sm:$0xff]   ;;  %v1162_v28 = vld [vmem:[#allocation10 + $0xc8] ss:$16 sps:$4 sm:$0xff]   ;;  %p1399_p8 = scmp.lt.s32.totalorder %s942_s17, %s942_s17 }
  0x5e   :  { %1074 = vmatprep.subr.bf16.mxu0 %v1459_v0  ;;  %v1183_v16 = vld [vmem:[#allocation10 + $0x64] ss:$16 sps:$4 sm:$0xff]   ;;  %v1185_v19 = vld [vmem:[#allocation10 + $0x60] ss:$16 sps:$4 sm:$0xff]   ;;  %v1170_v29 = vld [vmem:[#allocation10 + $0xac] ss:$16 sps:$4 sm:$0xff]  }
  0x5f   :  { %462 = vmatpush1.bf16.msra.mxu1 %v1167_v8  ;;  %v129_v18 = vld [vmem:[#allocation2] sm:$0xff]  ;;  %v1168_v30 = vld [vmem:[#allocation10 + $0xa8] ss:$16 sps:$4 sm:$0xff]   ;;  %v967_v45 = vld [vmem:[#allocation8] ss:$0 sm:$0xff]  ;;  %s1394_s18 = scalar_lea.vmem %s942_s17, 128 }
  0x60   :  { %463 = vmatprep.subr.bf16.mxu1 %v1171_v10  ;;  %v1189_v21 = vld [vmem:[#allocation10 + $0x44] ss:$16 sps:$4 sm:$0xff]   ;;  %v1191_v22 = vld [vmem:[#allocation10 + $0x40] ss:$16 sps:$4 sm:$0xff]   ;;  %v131_v25 = vpack.c.bf16 %v129_v18, %v129_v18  ;;  %v1176_v31 = vld [vmem:[#allocation10 + $0x8c] ss:$16 sps:$4 sm:$0xff]   ;;  %p1395_p7 = scmp.ne.s32.totalorder %s942_s17, %s1394_s18  ;;  %p1400_p9 = scmp.lt.s32.totalorder %s1394_s18, %s1394_s18 }
  0x61   :  { %1075 = vmatpush3.bf16.msra.mxu0 %v1150_v3  ;;  %v1195_v24 = vld [vmem:[#allocation10 + $0x24] ss:$16 sps:$4 sm:$0xff]   ;;  %v1197_v27 = vld [vmem:[#allocation10 + $0x20] ss:$16 sps:$4 sm:$0xff]   ;;  %v1174_v32 = vld [vmem:[#allocation10 + $0x88] ss:$16 sps:$4 sm:$0xff]  }
  0x62   :  { %1076 = vmatprep.subr.bf16.mxu0 %v1459_v0  ;;  %v1182_v33 = vld [vmem:[#allocation10 + $0x6c] ss:$16 sps:$4 sm:$0xff]   ;;  %v1180_v34 = vld [vmem:[#allocation10 + $0x68] ss:$16 sps:$4 sm:$0xff]   ;;  %v1201_v41 = vld [vmem:[#allocation10 + $0x4] ss:$16 sps:$4 sm:$0xff]   ;;  %p1401_p10 = por %p1400_p9, %p1399_p8 }
  0x63   :  { %464 = vmatpush1.bf16.msra.mxu1 %v1173_v11  ;;  %v1188_v35 = vld [vmem:[#allocation10 + $0x4c] ss:$16 sps:$4 sm:$0xff]   ;;  %v1186_v36 = vld [vmem:[#allocation10 + $0x48] ss:$16 sps:$4 sm:$0xff]   ;;  %v1203_v42 = vld [vmem:[#allocation10] ss:$16 sps:$4 sm:$0xff]  }
  0x64   :  { %465 = vmatprep.subr.bf16.mxu1 %v1177_v13  ;;  %v1194_v37 = vld [vmem:[#allocation10 + $0x2c] ss:$16 sps:$4 sm:$0xff]   ;;  %v1192_v38 = vld [vmem:[#allocation10 + $0x28] ss:$16 sps:$4 sm:$0xff]   ;;  %v1209_v51 = vld [vmem:[#allocation13 + $0x94] ss:$12 sps:$4 sm:$0xff]   ;;  %p1402_p11 = pnand %p1401_p10, %p1395_p7 }
  0x65   :  { %1077 = vmatpush3.bf16.msra.mxu0 %v1151_v4  ;;  %v1200_v39 = vld [vmem:[#allocation10 + $0xc] ss:$16 sps:$4 sm:$0xff]   ;;  %v1198_v40 = vld [vmem:[#allocation10 + $0x8] ss:$16 sps:$4 sm:$0xff]   ;;  %v1229_v57 = vld [vmem:[#allocation11 + $0x30] sm:$0xff]  }
  0x66   :  { %1078 = vmatprep.subr.bf16.mxu0 %v1459_v0  ;;  %v1206_v43 = vld [vmem:[#allocation13 + $0xac] ss:$12 sps:$4 sm:$0xff]   ;;  %v1204_v49 = vld [vmem:[#allocation13 + $0xa8] ss:$12 sps:$4 sm:$0xff]   ;;  %v1207_v55 = vld [vmem:[#allocation13 + $0x90] ss:$12 sps:$4 sm:$0xff]  }
  0x67   :  { %466 = vmatpush1.bf16.msra.mxu1 %v1179_v14  ;;  %v1228_v52 = vld [vmem:[#allocation11 + $0x38] sm:$0xff]   ;;  %v1215_v59 = vld [vmem:[#allocation13 + $0x64] ss:$12 sps:$4 sm:$0xff]   ;;  %v1230_v60 = vld [vmem:[#allocation11 + $0x28] sm:$0xff]   ;;  %v279_v14 = vlaneseq }
  0x68   :  { %467 = vmatprep.subr.bf16.mxu1 %v1183_v16  ;;  %v1212_v56 = vld [vmem:[#allocation13 + $0x7c] ss:$12 sps:$4 sm:$0xff]   ;;  %v1210_v58 = vld [vmem:[#allocation13 + $0x78] ss:$12 sps:$4 sm:$0xff]   ;;  %v1213_v61 = vld [vmem:[#allocation13 + $0x60] ss:$12 sps:$4 sm:$0xff]  }
  0x69   :  { %1079 = vmatpush3.bf16.msra.mxu0 %v1152_v9  ;;  %v1218_v62 = vld [vmem:[#allocation13 + $0x4c] ss:$12 sps:$4 sm:$0xff]   ;;  %v1231_v63 = vld [vmem:[#allocation11 + $0x20] sm:$0xff]   ;;  %v1216_v1 = vld [vmem:[#allocation13 + $0x48] ss:$12 sps:$4 sm:$0xff]  }
  0x6a   :  { %1080 = vmatprep.subr.bf16.mxu0 %v1459_v0  ;;  %v1221_v2 = vld [vmem:[#allocation13 + $0x34] ss:$12 sps:$4 sm:$0xff]   ;;  %v1232_v3 = vld [vmem:[#allocation11 + $0x18] sm:$0xff]   ;;  %v1227_v8 = vld [vmem:[#allocation13 + $0x4] ss:$12 sps:$4 sm:$0xff]  }
  0x6b   :  { %468 = vmatpush1.bf16.msra.mxu1 %v1185_v19  ;;  %v1219_v4 = vld [vmem:[#allocation13 + $0x30] ss:$12 sps:$4 sm:$0xff]   ;;  %v1222_v7 = vld [vmem:[#allocation13 + $0x18] ss:$12 sps:$4 sm:$0xff]   ;;  %v1234_v9 = vld [vmem:[#allocation11 + $0x8] sm:$0xff]  }
  0x6c   :  { %469 = vmatprep.subr.bf16.mxu1 %v1189_v21  ;;  %v1224_v5 = vld [vmem:[#allocation13 + $0x1c] ss:$12 sps:$4 sm:$0xff]   ;;  %v1233_v6 = vld [vmem:[#allocation11 + $0x10] sm:$0xff]   ;;  %v1225_v10 = vld [vmem:[#allocation13] ss:$12 sps:$4 sm:$0xff]  }
  0x6d   :  { %1081 = vmatpush3.bf16.msra.mxu0 %v1153_v12  ;;  %v1564_v11 = vld [vmem:[#allocation5] sm:$0xff]  ;;  %v1235_v13 = vld [vmem:[#allocation11] sm:$0xff]  }
  0x6e   :  { %1082 = vmatprep.subr.bf16.mxu0 %v1459_v0  ;;  %v1569_v12 = vpack.c.bf16 %v1564_v11, %v1564_v11 }
  0x6f   :  { %470 = vmatpush1.bf16.msra.mxu1 %v1191_v22 }
  0x70   :  { %471 = vmatprep.subr.bf16.mxu1 %v1195_v24 }
  0x71   :  { %1083 = vmatpush3.bf16.msra.mxu0 %v1154_v15  ;;  %v1573_v15 = vshrl.u32 %v279_v14, 7 }
  0x72   :  { %1084 = vmatprep.subr.bf16.mxu0 %v1459_v0 }
  0x73   :  { %472 = vmatpush1.bf16.msra.mxu1 %v1197_v27  ;;  %v281_v16 = vsub.s32 0, %v1573_v15  ;;  %v1236_v27 = vld [vmem:[#allocation13 + $0xb0] ss:$12 sps:$4 sm:$0xff]  }
  0x74   :  { %473 = vmatprep.subr.bf16.mxu1 %v1201_v41 }
  0x75   :  { %1085 = vmatpush3.bf16.msra.mxu0 %v1155_v17  ;;  %v1579_v17 = vld [vmem:[%s1619_s5] sm:$0xf] }
  0x76   :  { %500 = vmatprep.subr.bf16.mxu0 %v1158_v20  ;;  %v282_v18 = vrot.slane %v1579_v17, %v281_v16 }
  0x77   :  { %474 = vmatpush1.bf16.msra.mxu1 %v1203_v42 }
  0x78   :  { %1087 = vmatmul.mubr.bf16.vlgmr.msra.gmra.mxu0 %v131_v25  ;;  %1090 = vmatprep.subr.bf16.mxu1 %v1459_v0 }
  0x79   :  { %501 = vmatpush1.bf16.msra.mxu0 %v1156_v23  ;;  %532 = vmatprep.mubr.bf16.mxu0 %v1461_v44 }
  0x7a   :  { %502 = vmatprep.subr.bf16.mxu0 %v1164_v26 }
  0x7d   :  { %503 = vmatpush1.bf16.msra.mxu0 %v1162_v28 }
  0x7e   :  { %504 = vmatprep.subr.bf16.mxu0 %v1170_v29 }
  0x81   :  { %505 = vmatpush1.bf16.msra.mxu0 %v1168_v30 }
  0x82   :  { %506 = vmatprep.subr.bf16.mxu0 %v1176_v31  ;;  %v1237_v31 = vld [vmem:[#allocation13 + $0x98] ss:$12 sps:$4 sm:$0xff]  }
  0x85   :  { %507 = vmatpush1.bf16.msra.mxu0 %v1174_v32  ;;  %v1238_v32 = vld [vmem:[#allocation13 + $0x80] ss:$12 sps:$4 sm:$0xff]  }
  0x86   :  { %508 = vmatprep.subr.bf16.mxu0 %v1182_v33  ;;  %v1239_v33 = vld [vmem:[#allocation13 + $0x68] ss:$12 sps:$4 sm:$0xff]  }
  0x89   :  { %509 = vmatpush1.bf16.msra.mxu0 %v1180_v34  ;;  %v1240_v34 = vld [vmem:[#allocation13 + $0x50] ss:$12 sps:$4 sm:$0xff]  }
  0x8a   :  { %510 = vmatprep.subr.bf16.mxu0 %v1188_v35  ;;  %v1241_v35 = vld [vmem:[#allocation13 + $0x38] ss:$12 sps:$4 sm:$0xff]  }
  0x8d   :  { %511 = vmatpush1.bf16.msra.mxu0 %v1186_v36  ;;  %v285_v36 = vsub.s32 1, %v1573_v15 }
  0x8e   :  { %512 = vmatprep.subr.bf16.mxu0 %v1194_v37  ;;  %v687_v37 = vld [vmem:[%s1623_s9] sm:$0x7] }
  0x8f   :  { %v692_v41 = vrot.slane %v687_v37, %v281_v16 }
  0x91   :  { %513 = vmatpush1.bf16.msra.mxu0 %v1192_v38  ;;  %v289_v38 = vsub.s32 2, %v1573_v15 }
  0x92   :  { %514 = vmatprep.subr.bf16.mxu0 %v1200_v39  ;;  %v1242_v39 = vld [vmem:[#allocation13 + $0x20] ss:$12 sps:$4 sm:$0xff]  }
  0x93   :  { %v290_v42 = vrot.slane %v1579_v17, %v289_v38 }
  0x95   :  { %515 = vmatpush1.bf16.msra.mxu0 %v1198_v40  ;;  %v286_v40 = vrot.slane %v1579_v17, %v285_v36 }
  0x96   :  { %832 = vmatprep.subr.bf16.mxu0 %v1206_v43  ;;  %v696_v43 = vrot.slane %v687_v37, %v285_v36 }
 0x138   :  { %v238_v46 = vpop.f32.mrf.mxu0 }
 0x139   :  { %v239_v47 = vadd.f32 %v967_v45, %v238_v46  ;;  %v1243_v45 = vld [vmem:[#allocation13 + $0x8] ss:$12 sps:$4 sm:$0xff]  }
 0x13a   :  { %v1088_v48 = vpop.f32.mrf.mxu0 }
 0x13b   :  { %v244_v50 = vpack.c.bf16 %v239_v47, %v239_v47 }
 0x13c   :  { %v241_v53 = vpop.f32.mrf.mxu0 }
 0x13d   :  { %492 = vmatmul.mubr.bf16.vlgmr.msra.gmra.mxu1 %v244_v50  ;;  %533 = vmatmul.mubr.bf16.vlgmr.msra.gmra.mxu0 %v244_v50 }
 0x13e   :  { %833 = vmatpush1.bf16.msra.mxu0 %v1204_v49  ;;  %v1089_v54 = vpop.f32.mrf.mxu0  ;;  %864 = vmatprep.mubr.bf16.mxu0 %v1461_v44 }
 0x13f   :  { %834 = vmatprep.subr.bf16.mxu0 %v1209_v51  ;;  %1091 = vmatpush3.bf16.msra.mxu1 %v1228_v52 }
 0x140   :  { %1092 = vmatprep.subr.bf16.mxu1 %v1459_v0  ;;  %1106 = vmatprep.mubr.msk.bf16.mxu1 %vm1460_vm0, %v1459_v0 }
 0x142   :  { %835 = vmatpush1.bf16.msra.mxu0 %v1207_v55 }
 0x143   :  { %836 = vmatprep.subr.bf16.mxu0 %v1212_v56  ;;  %1093 = vmatpush3.bf16.msra.mxu1 %v1229_v57  ;;  %v1008_v56 = vld [vmem:[%s1621_s7] ss:$0 sm:$0xff] }
 0x144   :  { %1094 = vmatprep.subr.bf16.mxu1 %v1459_v0 }
 0x146   :  { %837 = vmatpush1.bf16.msra.mxu0 %v1210_v58 }
 0x147   :  { %838 = vmatprep.subr.bf16.mxu0 %v1215_v59  ;;  %1095 = vmatpush3.bf16.msra.mxu1 %v1230_v60 }
 0x148   :  { %1096 = vmatprep.subr.bf16.mxu1 %v1459_v0 }
 0x14a   :  { %839 = vmatpush1.bf16.msra.mxu0 %v1213_v61 }
 0x14b   :  { %840 = vmatprep.subr.bf16.mxu0 %v1218_v62  ;;  %1097 = vmatpush3.bf16.msra.mxu1 %v1231_v63 }
 0x14c   :  { %1098 = vmatprep.subr.bf16.mxu1 %v1459_v0 }
 0x14e   :  { %841 = vmatpush1.bf16.msra.mxu0 %v1216_v1 }
 0x14f   :  { %842 = vmatprep.subr.bf16.mxu0 %v1221_v2  ;;  %1099 = vmatpush3.bf16.msra.mxu1 %v1232_v3 }
 0x150   :  { %1100 = vmatprep.subr.bf16.mxu1 %v1459_v0 }
 0x152   :  { %843 = vmatpush1.bf16.msra.mxu0 %v1219_v4 }
 0x153   :  { %844 = vmatprep.subr.bf16.mxu0 %v1224_v5  ;;  %1101 = vmatpush3.bf16.msra.mxu1 %v1233_v6 }
 0x154   :  { %1102 = vmatprep.subr.bf16.mxu1 %v1459_v0 }
 0x156   :  { %845 = vmatpush1.bf16.msra.mxu0 %v1222_v7 }
 0x157   :  { %846 = vmatprep.subr.bf16.mxu0 %v1227_v8  ;;  %1103 = vmatpush3.bf16.msra.mxu1 %v1234_v9 }
 0x158   :  { %1104 = vmatprep.subr.bf16.mxu1 %v1459_v0 }
 0x15a   :  { %847 = vmatpush1.bf16.msra.mxu0 %v1225_v10 }
 0x15b   :  { %1105 = vmatpush3.bf16.msra.mxu1 %v1235_v13 }
 0x15c   :  { %1110 = vmatprep.subr.bf16.mxu1 %v1459_v0 }
 0x15d   :  { %865 = vmatmul.mubr.bf16.vlgmr.msra.gmra.mxu0 %v1569_v12 }
 0x1fd   :  { %v493_v19 = vpop.f32.mrf.mxu1  ;;  %v534_v20 = vpop.f32.mrf.mxu0 }
 0x1fe   :  { %v494_v21 = vadd.f32 %v493_v19, %v282_v18  ;;  %v535_v49 = vadd.f32 %v534_v20, %v290_v42 }
 0x1ff   :  { %v495_v22 = vpop.f32.mrf.mxu1  ;;  %v1582_v23 = vpop.f32.mrf.mxu0 }
 0x200   :  { %v541_v24 = vmax.f32 %v494_v21, 0.0  ;;  %v496_v46 = vadd.f32 %v495_v22, %v286_v40 }
 0x201   :  { %v497_v25 = vpop.f32.mrf.mxu1  ;;  %v538_v26 = vpop.f32.mrf.mxu0 }
 0x202   :  { %v542_v28 = vpack.c.bf16 %v541_v24, %v541_v24 }
 0x203   :  { %v498_v29 = vpop.f32.mrf.mxu1  ;;  %v539_v30 = vpop.f32.mrf.mxu0 }
 0x204   :  { %1107 = vmatmul.mubr.bf16.vlgmr.msra.gmra.mxu1 %v542_v28 }
 0x205   :  { %1111 = vmatpush3.bf16.msra.mxu1 %v1236_v27  ;;  %1126 = vmatprep.mubr.msk.bf16.mxu1 %vm1460_vm0, %v1459_v0 }
 0x206   :  { %1112 = vmatprep.subr.bf16.mxu1 %v1459_v0 }
 0x209   :  { %1113 = vmatpush3.bf16.msra.mxu1 %v1237_v31 }
 0x20a   :  { %1114 = vmatprep.subr.bf16.mxu1 %v1459_v0 }
 0x20d   :  { %1115 = vmatpush3.bf16.msra.mxu1 %v1238_v32 }
 0x20e   :  { %1116 = vmatprep.subr.bf16.mxu1 %v1459_v0 }
 0x211   :  { %1117 = vmatpush3.bf16.msra.mxu1 %v1239_v33 }
 0x212   :  { %1118 = vmatprep.subr.bf16.mxu1 %v1459_v0 }
 0x215   :  { %1119 = vmatpush3.bf16.msra.mxu1 %v1240_v34 }
 0x216   :  { %1120 = vmatprep.subr.bf16.mxu1 %v1459_v0 }
 0x219   :  { %1121 = vmatpush3.bf16.msra.mxu1 %v1241_v35 }
 0x21a   :  { %1122 = vmatprep.subr.bf16.mxu1 %v1459_v0 }
 0x21d   :  { %v866_v44 = vpop.f32.mrf.mxu0  ;;  %1123 = vmatpush3.bf16.msra.mxu1 %v1242_v39 }
 0x21e   :  { %v867_v47 = vadd.f32 %v866_v44, %v692_v41  ;;  %1124 = vmatprep.subr.bf16.mxu1 %v1459_v0 }
 0x21f   :  { %v868_v48 = vpop.f32.mrf.mxu0 }
 0x220   :  { %v913_v50 = vadd.f32 %v867_v47, %v496_v46  ;;  %v869_v51 = vadd.f32 %v868_v48, %v696_v43 }
 0x221   :  { %1125 = vmatpush3.bf16.msra.mxu1 %v1243_v45  ;;  %v870_v52 = vpop.f32.mrf.mxu0 }
 0x222   :  { %v920_v53 = vadd.f32 %v869_v51, %v535_v49  ;;  %v1041_v55 = vmul.f32 -1.442695, %v913_v50 }
 0x223   :  { %v871_v54 = vpop.f32.mrf.mxu0 }
 0x224   :  { %1127 = vmatmul.mubr.bf16.vlgmr.msra.gmra.mxu1 %v1569_v12  ;;  %1244 = vpow2.f32 %v1041_v55 }
 0x2c4   :  { %v648_v57 = vpop.f32.mrf.mxu1 }
 0x2c5   :  { %v649_v0 = vadd.f32 %v1008_v56, %v648_v57 }
 0x2c6   :  { %v1108_v58 = vpop.f32.mrf.mxu1 }
 0x2c7   :  { %654 = vst [vmem:[#allocation14] sm:$0xff] %v649_v0 }
 0x2c8   :  { %v651_v59 = vpop.f32.mrf.mxu1 }
 0x2c9   :  { %1405 = shalt.err (!%p1402_p11)
}
 0x2ca   :  { %944 = dma.vmem_to_hbm [thread:$0]  %s942_s17, 128, %s1624_s10, [#allocation4]   ;;  %v1109_v60 = vpop.f32.mrf.mxu1  ;;  %v1042_v61 = vmul.f32 -1.442695, %v920_v53  ;;  %v1245_v62 = vpop.eup %1244  ;;  %v293_v1 = vsub.s32 3, %v1573_v15  ;;  %v700_v3 = vrot.slane %v687_v37, %v289_v38 }
 0x2cb   :  { %v917_v63 = vadd.f32 1.0, %v1245_v62  ;;  %s1463_s7 = smov [#allocation15]  }
 0x2cc   :  { %1246 = vpow2.f32 %v1042_v61  ;;  %v294_v4 = vrot.slane %v1579_v17, %v293_v1  ;;  %s951_s10 = sshll.u32 %s1463_s7, 4  ;;  %s952_s10 = int_to_ptr.vmem [resolvable:$true] %s951_s10 }
 0x2cd   :  { %1248 = vrcp.f32 %v917_v63  ;;  %s1414_s21 = scalar_lea.vmem %s952_s10, 128  ;;  %p1419_p13 = scmp.lt.s32.totalorder %s952_s10, %s952_s10 }
 0x2ce   :  { %v537_v10 = vadd.f32 %v1582_v23, %v294_v4  ;;  %p1415_p12 = scmp.ne.s32.totalorder %s952_s10, %s1414_s21  ;;  %p1420_p0 = scmp.lt.s32.totalorder %s1414_s21, %s1414_s21 }
 0x2d0   :  { %p1421_p1 = por %p1420_p0, %p1419_p13 }
 0x2d2   :  { %p1422_p2 = pnand %p1421_p1, %p1415_p12 }
 0x2d9   :  { %v1247_v2 = vpop.eup %1246 }
 0x2da   :  { %v924_v5 = vadd.f32 1.0, %v1247_v2  ;;  %v1249_v8 = vpop.eup %1248 }
 0x2dc   :  { %1250 = vrcp.f32 %v924_v5 }
 0x2e4   :  { %v907_v6 = vpop.f32.mrf.mxu1 }
 0x2e5   :  { %v908_v7 = vadd.f32 %v907_v6, %v700_v3 }
 0x2e6   :  { %v1128_v9 = vpop.f32.mrf.mxu1 }
 0x2e7   :  { %v927_v12 = vmul.f32 %v1249_v8, %v908_v7 }
 0x2e8   :  { %v910_v13 = vpop.f32.mrf.mxu1 }
 0x2e9   :  { %v928_v14 = vadd.f32 %v927_v12, %v537_v10  ;;  %v1251_v18 = vpop.eup %1250 }
 0x2ea   :  { %v1129_v16 = vpop.f32.mrf.mxu1  ;;  %v930_v19 = vsub.f32 1.0, %v1251_v18  ;;  %v932_v17 = vmul.f32 %v1251_v18, %v1564_v11 }
 0x2eb   :  { %1252 = vtanh.f32 %v928_v14 }
 0x2f8   :  { %v1253_v15 = vpop.eup %1252 }
 0x2f9   :  { %v931_v20 = vmul.f32 %v1253_v15, %v930_v19 }
 0x2fb   :  { %v933_v21 = vadd.f32 %v932_v17, %v931_v20 }
 0x2fd   :  { %934 = vst [vmem:[#allocation15] sm:$0xff] %v933_v21 }
 0x2fe   :  { %1425 = shalt.err (!%p1422_p2)
}
 0x2ff   :  { %954 = dma.vmem_to_hbm [thread:$0]  %s952_s10, 128, %s1625_s11, [#allocation16]  }
 0x300   :  { %1442 = dma.done.wait [#allocation4], 128  }
 0x301   :  { %1443 = vsyncadd [#allocation4], 4294967168 }
 0x302   :  { %1444 = dma.done.wait [#allocation16], 128  }
 0x303   :  { %1445 = vsyncadd [#allocation16], 4294967168 }
 0x304   :  { %961 = vsyncpa [#allocation3], 1 }
 0x305   :  { %962 = vsyncpa [#allocation6], 1 }
 0x306   :  { %963 = vsyncpa [#allocation9], 1 }
 0x307   :  { %964 = vsyncpa [#allocation12], 1 }
 0x308   :  { %965 = vsyncpa [#allocation4], 1 }
 0x309   :  { %966 = vsyncpa [#allocation16], 1 }

// kernel: tpu_custom_call.1
= control target key start
LH: loop header
LB: loop body
LE: loop exit
PB: predicated region body
PF: predicated region fallthrough
CT: control target
= control target key end

     0   :  { %17 = vsyncpa [#allocation3], 0  ;;  %s1614_s0 = inlined_call_operand.hbm [shape: f32[8,128], index: 0, kind: input, shape index: {}]   ;;  %s1615_s1 = inlined_call_operand.hbm [shape: f32[8,128], index: 1, kind: input, shape index: {}]   ;;  %s1616_s2 = inlined_call_operand.hbm [shape: bf16[128,128], index: 2, kind: input, shape index: {}]   ;;  %s1617_s3 = inlined_call_operand.hbm [shape: f32[1,128], index: 3, kind: input, shape index: {}]   ;;  %s1618_s4 = inlined_call_operand.hbm [shape: bf16[128,512], index: 4, kind: input, shape index: {}]   ;;  %s1619_s5 = inlined_call_operand.vmem [shape: f32[1,512], index: 5, kind: input, shape index: {}]   ;;  %s1620_s6 = inlined_call_operand.hbm [shape: bf16[128,128], index: 6, kind: input, shape index: {}]   ;;  %s1621_s7 = inlined_call_operand.vmem [shape: f32[1,128], index: 7, kind: input, shape index: {}]   ;;  %s1622_s8 = inlined_call_operand.hbm [shape: bf16[128,384], index: 8, kind: input, shape index: {}]   ;;  %s1623_s9 = inlined_call_operand.vmem [shape: f32[1,384], index: 9, kind: input, shape index: {}]   ;;  %s1624_s10 = inlined_call_operand.hbm [shape: f32[8,128], index: 10, kind: output, shape index: {0}]   ;;  %s1625_s11 = inlined_call_operand.hbm [shape: f32[8,128], index: 11, kind: output, shape index: {1}]  }
   0x1   :  { %18 = vsyncpa [#allocation6], 0 }
   0x2   :  { %19 = vsyncpa [#allocation9], 0 }
   0x3   :  { %20 = vsyncpa [#allocation12], 0 }
   0x4   :  { %21 = vsyncpa [#allocation4], 0 }
   0x5   :  { %22 = vsyncpa [#allocation16], 0  ;;  %s1446_s17 = smov [#allocation5]   ;;  %s1447_s19 = smov [#allocation8]  }
   0x6   :  { %s39_s18 = sshll.u32 %s1446_s17, 4  ;;  %s61_s20 = sshll.u32 %s1447_s19, 4  ;;  %s40_s18 = int_to_ptr.vmem [resolvable:$true] %s39_s18  ;;  %s62_s20 = int_to_ptr.vmem [resolvable:$true] %s61_s20 }
   0x7   :  { %s1262_s21 = scalar_lea.vmem %s40_s18, 128  ;;  %p1267_p1 = scmp.lt.s32.totalorder %s40_s18, %s40_s18 }
   0x8   :  { %p1263_p0 = scmp.ne.s32.totalorder %s40_s18, %s1262_s21  ;;  %p1268_p2 = scmp.lt.s32.totalorder %s1262_s21, %s1262_s21 }
   0xa   :  { %p1269_p3 = por %p1268_p2, %p1267_p1 }
   0xc   :  { %p1270_p4 = pnand %p1269_p3, %p1263_p0 }
   0xe   :  { %1273 = shalt.err (!%p1270_p4)
}
   0xf   :  { %42 = dma.hbm_to_vmem [thread:$0]  %s1615_s1, 128, %s40_s18, [#allocation6]  }
  0x10   :  { %s1282_s24 = scalar_lea.vmem %s62_s20, 16  ;;  %s1286_s25 = scalar_lea.vmem %s62_s20, 32 }
  0x11   :  { %p1283_p5 = scmp.ne.s32.totalorder %s62_s20, %s1282_s24  ;;  %p1287_p6 = scmp.lt.s32.totalorder %s62_s20, %s62_s20 }
  0x12   :  { %p1288_p7 = scmp.lt.s32.totalorder %s1286_s25, %s1282_s24 }
  0x14   :  { %p1289_p8 = por %p1288_p7, %p1287_p6 }
  0x16   :  { %p1290_p9 = pnand %p1289_p8, %p1283_p5 }
  0x18   :  { %1293 = shalt.err (!%p1290_p9)
}
  0x19   :  { %64 = dma.hbm_to_vmem [thread:$0]  %s1617_s3, 16, %s62_s20, [#allocation9]  }
  0x1a   :  { %s1448_s28 = smov [#allocation11]   ;;  %s1449_s30 = smov [#allocation2]  }
  0x1b   :  { %s84_s29 = sshll.u32 %s1448_s28, 4  ;;  %s29_s12 = sshll.u32 %s1449_s30, 4  ;;  %s85_s29 = int_to_ptr.vmem [resolvable:$true] %s84_s29  ;;  %s30_s12 = int_to_ptr.vmem [resolvable:$true] %s29_s12 }
  0x1c   :  { %s1302_s13 = scalar_lea.vmem %s85_s29, 1024  ;;  %p1307_p11 = scmp.lt.s32.totalorder %s85_s29, %s85_s29 }
  0x1d   :  { %p1303_p10 = scmp.ne.s32.totalorder %s85_s29, %s1302_s13  ;;  %p1308_p12 = scmp.lt.s32.totalorder %s1302_s13, %s1302_s13 }
  0x1f   :  { %p1309_p13 = por %p1308_p12, %p1307_p11 }
  0x21   :  { %p1310_p0 = pnand %p1309_p13, %p1303_p10 }
  0x23   :  { %1313 = shalt.err (!%p1310_p0)
}
  0x24   :  { %s1450_s1 = smov 64   ;;  %s1451_s14 = smov 4  }
  0x25   :  { %90 = dma.hbm_to_vmem [thread:$0]  %s1620_s6, 1024, %s85_s29, [#allocation12], %s1450_s1, %s1450_s1, %s1451_s14  }
  0x26   :  { %s1322_s3 = scalar_lea.vmem %s30_s12, 128  ;;  %p1327_p2 = scmp.lt.s32.totalorder %s30_s12, %s30_s12 }
  0x27   :  { %p1323_p1 = scmp.ne.s32.totalorder %s30_s12, %s1322_s3  ;;  %p1328_p3 = scmp.lt.s32.totalorder %s1322_s3, %s1322_s3 }
  0x29   :  { %p1329_p4 = por %p1328_p3, %p1327_p2 }
  0x2b   :  { %p1330_p5 = pnand %p1329_p4, %p1323_p1 }
  0x2d   :  { %1333 = shalt.err (!%p1330_p5)
}
  0x2e   :  { %32 = dma.hbm_to_vmem [thread:$0]  %s1614_s0, 128, %s30_s12, [#allocation3]  }
  0x2f   :  { %s1452_s19 = smov [#allocation7]   ;;  %s1453_s21 = smov [#allocation10]  }
  0x30   :  { %s48_s20 = sshll.u32 %s1452_s19, 4  ;;  %s70_s22 = sshll.u32 %s1453_s21, 4  ;;  %s49_s20 = int_to_ptr.vmem [resolvable:$true] %s48_s20  ;;  %s71_s22 = int_to_ptr.vmem [resolvable:$true] %s70_s22 }
  0x31   :  { %s1342_s23 = scalar_lea.vmem %s49_s20, 1024  ;;  %p1347_p7 = scmp.lt.s32.totalorder %s49_s20, %s49_s20 }
  0x32   :  { %p1343_p6 = scmp.ne.s32.totalorder %s49_s20, %s1342_s23  ;;  %p1348_p8 = scmp.lt.s32.totalorder %s1342_s23, %s1342_s23 }
  0x34   :  { %p1349_p9 = por %p1348_p8, %p1347_p7 }
  0x36   :  { %p1350_p10 = pnand %p1349_p9, %p1343_p6 }
  0x38   :  { %1353 = shalt.err (!%p1350_p10)
}
  0x39   :  { %54 = dma.hbm_to_vmem [thread:$0]  %s1616_s2, 1024, %s49_s20, [#allocation6], %s1450_s1, %s1450_s1, %s1451_s14  }
  0x3a   :  { %s1362_s25 = scalar_lea.vmem %s71_s22, 4096  ;;  %p1367_p12 = scmp.lt.s32.totalorder %s71_s22, %s71_s22 }
  0x3b   :  { %p1363_p11 = scmp.ne.s32.totalorder %s71_s22, %s1362_s25  ;;  %p1368_p13 = scmp.lt.s32.totalorder %s1362_s25, %s1362_s25 }
  0x3d   :  { %p1369_p0 = por %p1368_p13, %p1367_p12 }
  0x3f   :  { %p1370_p1 = pnand %p1369_p0, %p1363_p11 }
  0x41   :  { %1373 = shalt.err (!%p1370_p1)
}
  0x42   :  { %s1454_s0 = smov 256   ;;  %s1455_s26 = smov 16  }
  0x43   :  { %76 = dma.hbm_to_vmem [thread:$0]  %s1618_s4, 4096, %s71_s22, [#allocation9], %s1454_s0, %s1454_s0, %s1455_s26  }
  0x44   :  { %s1456_s29 = smov [#allocation13]  }
  0x45   :  { %s98_s30 = sshll.u32 %s1456_s29, 4  ;;  %s99_s30 = int_to_ptr.vmem [resolvable:$true] %s98_s30 }
  0x46   :  { %s1382_s12 = scalar_lea.vmem %s99_s30, 3072  ;;  %p1387_p3 = scmp.lt.s32.totalorder %s99_s30, %s99_s30 }
  0x47   :  { %p1383_p2 = scmp.ne.s32.totalorder %s99_s30, %s1382_s12  ;;  %p1388_p4 = scmp.lt.s32.totalorder %s1382_s12, %s1382_s12 }
  0x49   :  { %p1389_p5 = por %p1388_p4, %p1387_p3 }
  0x4b   :  { %p1390_p6 = pnand %p1389_p5, %p1383_p2 }
  0x4d   :  { %1393 = shalt.err (!%p1390_p6)
}
  0x4e   :  { %s1457_s2 = smov 192   ;;  %s1458_s13 = smov 12  }
  0x4f   :  { %104 = dma.hbm_to_vmem [thread:$0]  %s1622_s8, 3072, %s99_s30, [#allocation12], %s1457_s2, %s1457_s2, %s1458_s13  }
  0x50   :  { %1434 = dma.done.wait [#allocation3], 128  }
  0x51   :  { %1435 = vsyncadd [#allocation3], 4294967168 }
  0x52   :  { %1436 = dma.done.wait [#allocation6], 1152  }
  0x53   :  { %1437 = vsyncadd [#allocation6], 4294966144 }
  0x54   :  { %1438 = dma.done.wait [#allocation9], 4112  }
  0x55   :  { %1439 = vsyncadd [#allocation9], 4294963184 }
  0x56   :  { %1440 = dma.done.wait [#allocation12], 4096  }
  0x57   :  { %1441 = vsyncadd [#allocation12], 4294963200  ;;  %v1459_v0 = vmov 0.0   ;;  %vm1460_vm0 = vmmov 0   ;;  %v1148_v1 = vld [vmem:[#allocation7 + $0x38] sm:$0xff]   ;;  %v1149_v2 = vld [vmem:[#allocation7 + $0x30] sm:$0xff]  }
  0x58   :  { %1070 = vmatprep.subr.bf16.mxu0 %v1459_v0  ;;  %1086 = vmatprep.mubr.msk.bf16.mxu0 %vm1460_vm0, %v1459_v0  ;;  %v1150_v3 = vld [vmem:[#allocation7 + $0x28] sm:$0xff]   ;;  %v1151_v4 = vld [vmem:[#allocation7 + $0x20] sm:$0xff]   ;;  %v1152_v9 = vld [vmem:[#allocation7 + $0x18] sm:$0xff]   ;;  %v1461_v44 = vmov 0   ;;  %s1462_s3 = smov [#allocation14]  }
  0x59   :  { %1071 = vmatpush3.bf16.msra.mxu0 %v1148_v1  ;;  %v1159_v5 = vld [vmem:[#allocation10 + $0xe4] ss:$16 sps:$4 sm:$0xff]   ;;  %v1161_v6 = vld [vmem:[#allocation10 + $0xe0] ss:$16 sps:$4 sm:$0xff]   ;;  %v1158_v20 = vld [vmem:[#allocation10 + $0xec] ss:$16 sps:$4 sm:$0xff]   ;;  %491 = vmatprep.mubr.bf16.mxu1 %v1461_v44 }
  0x5a   :  { %1072 = vmatprep.subr.bf16.mxu0 %v1459_v0  ;;  %459 = vmatprep.subr.bf16.mxu1 %v1159_v5  ;;  %v1165_v7 = vld [vmem:[#allocation10 + $0xc4] ss:$16 sps:$4 sm:$0xff]   ;;  %v1167_v8 = vld [vmem:[#allocation10 + $0xc0] ss:$16 sps:$4 sm:$0xff]   ;;  %v1156_v23 = vld [vmem:[#allocation10 + $0xe8] ss:$16 sps:$4 sm:$0xff]  }
  0x5b   :  { %460 = vmatpush1.bf16.msra.mxu1 %v1161_v6  ;;  %v1171_v10 = vld [vmem:[#allocation10 + $0xa4] ss:$16 sps:$4 sm:$0xff]   ;;  %v1173_v11 = vld [vmem:[#allocation10 + $0xa0] ss:$16 sps:$4 sm:$0xff]   ;;  %v1164_v26 = vld [vmem:[#allocation10 + $0xcc] ss:$16 sps:$4 sm:$0xff]  }
  0x5c   :  { %461 = vmatprep.subr.bf16.mxu1 %v1165_v7  ;;  %v1153_v12 = vld [vmem:[#allocation7 + $0x10] sm:$0xff]   ;;  %v1154_v15 = vld [vmem:[#allocation7 + $0x8] sm:$0xff]   ;;  %v1155_v17 = vld [vmem:[#allocation7] sm:$0xff]   ;;  %s941_s17 = sshll.u32 %s1462_s3, 4  ;;  %s942_s17 = int_to_ptr.vmem [resolvable:$true] %s941_s17 }
  0x5d   :  { %1073 = vmatpush3.bf16.msra.mxu0 %v1149_v2  ;;  %v1177_v13 = vld [vmem:[#allocation10 + $0x84] ss:$16 sps:$4 sm:$0xff]   ;;  %v1179_v14 = vld [vmem:[#allocation10 + $0x80] ss:$16 sps:$4 sm:$0xff]   ;;  %v1162_v28 = vld [vmem:[#allocation10 + $0xc8] ss:$16 sps:$4 sm:$0xff]   ;;  %p1399_p8 = scmp.lt.s32.totalorder %s942_s17, %s942_s17 }
  0x5e   :  { %1074 = vmatprep.subr.bf16.mxu0 %v1459_v0  ;;  %v1183_v16 = vld [vmem:[#allocation10 + $0x64] ss:$16 sps:$4 sm:$0xff]   ;;  %v1185_v19 = vld [vmem:[#allocation10 + $0x60] ss:$16 sps:$4 sm:$0xff]   ;;  %v1170_v29 = vld [vmem:[#allocation10 + $0xac] ss:$16 sps:$4 sm:$0xff]  }
  0x5f   :  { %462 = vmatpush1.bf16.msra.mxu1 %v1167_v8  ;;  %v129_v18 = vld [vmem:[#allocation2] sm:$0xff]  ;;  %v1168_v30 = vld [vmem:[#allocation10 + $0xa8] ss:$16 sps:$4 sm:$0xff]   ;;  %v967_v45 = vld [vmem:[#allocation8] ss:$0 sm:$0xff]  ;;  %s1394_s18 = scalar_lea.vmem %s942_s17, 128 }
  0x60   :  { %463 = vmatprep.subr.bf16.mxu1 %v1171_v10  ;;  %v1189_v21 = vld [vmem:[#allocation10 + $0x44] ss:$16 sps:$4 sm:$0xff]   ;;  %v1191_v22 = vld [vmem:[#allocation10 + $0x40] ss:$16 sps:$4 sm:$0xff]   ;;  %v131_v25 = vpack.c.bf16 %v129_v18, %v129_v18  ;;  %v1176_v31 = vld [vmem:[#allocation10 + $0x8c] ss:$16 sps:$4 sm:$0xff]   ;;  %p1395_p7 = scmp.ne.s32.totalorder %s942_s17, %s1394_s18  ;;  %p1400_p9 = scmp.lt.s32.totalorder %s1394_s18, %s1394_s18 }
  0x61   :  { %1075 = vmatpush3.bf16.msra.mxu0 %v1150_v3  ;;  %v1195_v24 = vld [vmem:[#allocation10 + $0x24] ss:$16 sps:$4 sm:$0xff]   ;;  %v1197_v27 = vld [vmem:[#allocation10 + $0x20] ss:$16 sps:$4 sm:$0xff]   ;;  %v1174_v32 = vld [vmem:[#allocation10 + $0x88] ss:$16 sps:$4 sm:$0xff]  }
  0x62   :  { %1076 = vmatprep.subr.bf16.mxu0 %v1459_v0  ;;  %v1182_v33 = vld [vmem:[#allocation10 + $0x6c] ss:$16 sps:$4 sm:$0xff]   ;;  %v1180_v34 = vld [vmem:[#allocation10 + $0x68] ss:$16 sps:$4 sm:$0xff]   ;;  %v1201_v41 = vld [vmem:[#allocation10 + $0x4] ss:$16 sps:$4 sm:$0xff]   ;;  %p1401_p10 = por %p1400_p9, %p1399_p8 }
  0x63   :  { %464 = vmatpush1.bf16.msra.mxu1 %v1173_v11  ;;  %v1188_v35 = vld [vmem:[#allocation10 + $0x4c] ss:$16 sps:$4 sm:$0xff]   ;;  %v1186_v36 = vld [vmem:[#allocation10 + $0x48] ss:$16 sps:$4 sm:$0xff]   ;;  %v1203_v42 = vld [vmem:[#allocation10] ss:$16 sps:$4 sm:$0xff]  }
  0x64   :  { %465 = vmatprep.subr.bf16.mxu1 %v1177_v13  ;;  %v1194_v37 = vld [vmem:[#allocation10 + $0x2c] ss:$16 sps:$4 sm:$0xff]   ;;  %v1192_v38 = vld [vmem:[#allocation10 + $0x28] ss:$16 sps:$4 sm:$0xff]   ;;  %v1209_v51 = vld [vmem:[#allocation13 + $0x94] ss:$12 sps:$4 sm:$0xff]   ;;  %p1402_p11 = pnand %p1401_p10, %p1395_p7 }
  0x65   :  { %1077 = vmatpush3.bf16.msra.mxu0 %v1151_v4  ;;  %v1200_v39 = vld [vmem:[#allocation10 + $0xc] ss:$16 sps:$4 sm:$0xff]   ;;  %v1198_v40 = vld [vmem:[#allocation10 + $0x8] ss:$16 sps:$4 sm:$0xff]   ;;  %v1229_v57 = vld [vmem:[#allocation11 + $0x30] sm:$0xff]  }
  0x66   :  { %1078 = vmatprep.subr.bf16.mxu0 %v1459_v0  ;;  %v1206_v43 = vld [vmem:[#allocation13 + $0xac] ss:$12 sps:$4 sm:$0xff]   ;;  %v1204_v49 = vld [vmem:[#allocation13 + $0xa8] ss:$12 sps:$4 sm:$0xff]   ;;  %v1207_v55 = vld [vmem:[#allocation13 + $0x90] ss:$12 sps:$4 sm:$0xff]  }
  0x67   :  { %466 = vmatpush1.bf16.msra.mxu1 %v1179_v14  ;;  %v1228_v52 = vld [vmem:[#allocation11 + $0x38] sm:$0xff]   ;;  %v1215_v59 = vld [vmem:[#allocation13 + $0x64] ss:$12 sps:$4 sm:$0xff]   ;;  %v1230_v60 = vld [vmem:[#allocation11 + $0x28] sm:$0xff]   ;;  %v279_v14 = vlaneseq }
  0x68   :  { %467 = vmatprep.subr.bf16.mxu1 %v1183_v16  ;;  %v1212_v56 = vld [vmem:[#allocation13 + $0x7c] ss:$12 sps:$4 sm:$0xff]   ;;  %v1210_v58 = vld [vmem:[#allocation13 + $0x78] ss:$12 sps:$4 sm:$0xff]   ;;  %v1213_v61 = vld [vmem:[#allocation13 + $0x60] ss:$12 sps:$4 sm:$0xff]  }
  0x69   :  { %1079 = vmatpush3.bf16.msra.mxu0 %v1152_v9  ;;  %v1218_v62 = vld [vmem:[#allocation13 + $0x4c] ss:$12 sps:$4 sm:$0xff]   ;;  %v1231_v63 = vld [vmem:[#allocation11 + $0x20] sm:$0xff]   ;;  %v1216_v1 = vld [vmem:[#allocation13 + $0x48] ss:$12 sps:$4 sm:$0xff]  }
  0x6a   :  { %1080 = vmatprep.subr.bf16.mxu0 %v1459_v0  ;;  %v1221_v2 = vld [vmem:[#allocation13 + $0x34] ss:$12 sps:$4 sm:$0xff]   ;;  %v1232_v3 = vld [vmem:[#allocation11 + $0x18] sm:$0xff]   ;;  %v1227_v8 = vld [vmem:[#allocation13 + $0x4] ss:$12 sps:$4 sm:$0xff]  }
  0x6b   :  { %468 = vmatpush1.bf16.msra.mxu1 %v1185_v19  ;;  %v1219_v4 = vld [vmem:[#allocation13 + $0x30] ss:$12 sps:$4 sm:$0xff]   ;;  %v1222_v7 = vld [vmem:[#allocation13 + $0x18] ss:$12 sps:$4 sm:$0xff]   ;;  %v1234_v9 = vld [vmem:[#allocation11 + $0x8] sm:$0xff]  }
  0x6c   :  { %469 = vmatprep.subr.bf16.mxu1 %v1189_v21  ;;  %v1224_v5 = vld [vmem:[#allocation13 + $0x1c] ss:$12 sps:$4 sm:$0xff]   ;;  %v1233_v6 = vld [vmem:[#allocation11 + $0x10] sm:$0xff]   ;;  %v1225_v10 = vld [vmem:[#allocation13] ss:$12 sps:$4 sm:$0xff]  }
  0x6d   :  { %1081 = vmatpush3.bf16.msra.mxu0 %v1153_v12  ;;  %v1564_v11 = vld [vmem:[#allocation5] sm:$0xff]  ;;  %v1235_v13 = vld [vmem:[#allocation11] sm:$0xff]  }
  0x6e   :  { %1082 = vmatprep.subr.bf16.mxu0 %v1459_v0  ;;  %v1569_v12 = vpack.c.bf16 %v1564_v11, %v1564_v11 }
  0x6f   :  { %470 = vmatpush1.bf16.msra.mxu1 %v1191_v22 }
  0x70   :  { %471 = vmatprep.subr.bf16.mxu1 %v1195_v24 }
  0x71   :  { %1083 = vmatpush3.bf16.msra.mxu0 %v1154_v15  ;;  %v1573_v15 = vshrl.u32 %v279_v14, 7 }
  0x72   :  { %1084 = vmatprep.subr.bf16.mxu0 %v1459_v0 }
  0x73   :  { %472 = vmatpush1.bf16.msra.mxu1 %v1197_v27  ;;  %v281_v16 = vsub.s32 0, %v1573_v15  ;;  %v1236_v27 = vld [vmem:[#allocation13 + $0xb0] ss:$12 sps:$4 sm:$0xff]  }
  0x74   :  { %473 = vmatprep.subr.bf16.mxu1 %v1201_v41 }
  0x75   :  { %1085 = vmatpush3.bf16.msra.mxu0 %v1155_v17  ;;  %v1579_v17 = vld [vmem:[%s1619_s5] sm:$0xf] }
  0x76   :  { %500 = vmatprep.subr.bf16.mxu0 %v1158_v20  ;;  %v282_v18 = vrot.slane %v1579_v17, %v281_v16 }
  0x77   :  { %474 = vmatpush1.bf16.msra.mxu1 %v1203_v42 }
  0x78   :  { %1087 = vmatmul.mubr.bf16.vlgmr.msra.gmra.mxu0 %v131_v25  ;;  %1090 = vmatprep.subr.bf16.mxu1 %v1459_v0 }
  0x79   :  { %501 = vmatpush1.bf16.msra.mxu0 %v1156_v23  ;;  %532 = vmatprep.mubr.bf16.mxu0 %v1461_v44 }
  0x7a   :  { %502 = vmatprep.subr.bf16.mxu0 %v1164_v26 }
  0x7d   :  { %503 = vmatpush1.bf16.msra.mxu0 %v1162_v28 }
  0x7e   :  { %504 = vmatprep.subr.bf16.mxu0 %v1170_v29 }
  0x81   :  { %505 = vmatpush1.bf16.msra.mxu0 %v1168_v30 }
  0x82   :  { %506 = vmatprep.subr.bf16.mxu0 %v1176_v31  ;;  %v1237_v31 = vld [vmem:[#allocation13 + $0x98] ss:$12 sps:$4 sm:$0xff]  }
  0x85   :  { %507 = vmatpush1.bf16.msra.mxu0 %v1174_v32  ;;  %v1238_v32 = vld [vmem:[#allocation13 + $0x80] ss:$12 sps:$4 sm:$0xff]  }
  0x86   :  { %508 = vmatprep.subr.bf16.mxu0 %v1182_v33  ;;  %v1239_v33 = vld [vmem:[#allocation13 + $0x68] ss:$12 sps:$4 sm:$0xff]  }
  0x89   :  { %509 = vmatpush1.bf16.msra.mxu0 %v1180_v34  ;;  %v1240_v34 = vld [vmem:[#allocation13 + $0x50] ss:$12 sps:$4 sm:$0xff]  }
  0x8a   :  { %510 = vmatprep.subr.bf16.mxu0 %v1188_v35  ;;  %v1241_v35 = vld [vmem:[#allocation13 + $0x38] ss:$12 sps:$4 sm:$0xff]  }
  0x8d   :  { %511 = vmatpush1.bf16.msra.mxu0 %v1186_v36  ;;  %v285_v36 = vsub.s32 1, %v1573_v15 }
  0x8e   :  { %512 = vmatprep.subr.bf16.mxu0 %v1194_v37  ;;  %v687_v37 = vld [vmem:[%s1623_s9] sm:$0x7] }
  0x8f   :  { %v692_v41 = vrot.slane %v687_v37, %v281_v16 }
  0x91   :  { %513 = vmatpush1.bf16.msra.mxu0 %v1192_v38  ;;  %v289_v38 = vsub.s32 2, %v1573_v15 }
  0x92   :  { %514 = vmatprep.subr.bf16.mxu0 %v1200_v39  ;;  %v1242_v39 = vld [vmem:[#allocation13 + $0x20] ss:$12 sps:$4 sm:$0xff]  }
  0x93   :  { %v290_v42 = vrot.slane %v1579_v17, %v289_v38 }
  0x95   :  { %515 = vmatpush1.bf16.msra.mxu0 %v1198_v40  ;;  %v286_v40 = vrot.slane %v1579_v17, %v285_v36 }
  0x96   :  { %832 = vmatprep.subr.bf16.mxu0 %v1206_v43  ;;  %v696_v43 = vrot.slane %v687_v37, %v285_v36 }
 0x138   :  { %v238_v46 = vpop.f32.mrf.mxu0 }
 0x139   :  { %v239_v47 = vadd.f32 %v967_v45, %v238_v46  ;;  %v1243_v45 = vld [vmem:[#allocation13 + $0x8] ss:$12 sps:$4 sm:$0xff]  }
 0x13a   :  { %v1088_v48 = vpop.f32.mrf.mxu0 }
 0x13b   :  { %v244_v50 = vpack.c.bf16 %v239_v47, %v239_v47 }
 0x13c   :  { %v241_v53 = vpop.f32.mrf.mxu0 }
 0x13d   :  { %492 = vmatmul.mubr.bf16.vlgmr.msra.gmra.mxu1 %v244_v50  ;;  %533 = vmatmul.mubr.bf16.vlgmr.msra.gmra.mxu0 %v244_v50 }
 0x13e   :  { %833 = vmatpush1.bf16.msra.mxu0 %v1204_v49  ;;  %v1089_v54 = vpop.f32.mrf.mxu0  ;;  %864 = vmatprep.mubr.bf16.mxu0 %v1461_v44 }
 0x13f   :  { %834 = vmatprep.subr.bf16.mxu0 %v1209_v51  ;;  %1091 = vmatpush3.bf16.msra.mxu1 %v1228_v52 }
 0x140   :  { %1092 = vmatprep.subr.bf16.mxu1 %v1459_v0  ;;  %1106 = vmatprep.mubr.msk.bf16.mxu1 %vm1460_vm0, %v1459_v0 }
 0x142   :  { %835 = vmatpush1.bf16.msra.mxu0 %v1207_v55 }
 0x143   :  { %836 = vmatprep.subr.bf16.mxu0 %v1212_v56  ;;  %1093 = vmatpush3.bf16.msra.mxu1 %v1229_v57  ;;  %v1008_v56 = vld [vmem:[%s1621_s7] ss:$0 sm:$0xff] }
 0x144   :  { %1094 = vmatprep.subr.bf16.mxu1 %v1459_v0 }
 0x146   :  { %837 = vmatpush1.bf16.msra.mxu0 %v1210_v58 }
 0x147   :  { %838 = vmatprep.subr.bf16.mxu0 %v1215_v59  ;;  %1095 = vmatpush3.bf16.msra.mxu1 %v1230_v60 }
 0x148   :  { %1096 = vmatprep.subr.bf16.mxu1 %v1459_v0 }
 0x14a   :  { %839 = vmatpush1.bf16.msra.mxu0 %v1213_v61 }
 0x14b   :  { %840 = vmatprep.subr.bf16.mxu0 %v1218_v62  ;;  %1097 = vmatpush3.bf16.msra.mxu1 %v1231_v63 }
 0x14c   :  { %1098 = vmatprep.subr.bf16.mxu1 %v1459_v0 }
 0x14e   :  { %841 = vmatpush1.bf16.msra.mxu0 %v1216_v1 }
 0x14f   :  { %842 = vmatprep.subr.bf16.mxu0 %v1221_v2  ;;  %1099 = vmatpush3.bf16.msra.mxu1 %v1232_v3 }
 0x150   :  { %1100 = vmatprep.subr.bf16.mxu1 %v1459_v0 }
 0x152   :  { %843 = vmatpush1.bf16.msra.mxu0 %v1219_v4 }
 0x153   :  { %844 = vmatprep.subr.bf16.mxu0 %v1224_v5  ;;  %1101 = vmatpush3.bf16.msra.mxu1 %v1233_v6 }
 0x154   :  { %1102 = vmatprep.subr.bf16.mxu1 %v1459_v0 }
 0x156   :  { %845 = vmatpush1.bf16.msra.mxu0 %v1222_v7 }
 0x157   :  { %846 = vmatprep.subr.bf16.mxu0 %v1227_v8  ;;  %1103 = vmatpush3.bf16.msra.mxu1 %v1234_v9 }
 0x158   :  { %1104 = vmatprep.subr.bf16.mxu1 %v1459_v0 }
 0x15a   :  { %847 = vmatpush1.bf16.msra.mxu0 %v1225_v10 }
 0x15b   :  { %1105 = vmatpush3.bf16.msra.mxu1 %v1235_v13 }
 0x15c   :  { %1110 = vmatprep.subr.bf16.mxu1 %v1459_v0 }
 0x15d   :  { %865 = vmatmul.mubr.bf16.vlgmr.msra.gmra.mxu0 %v1569_v12 }
 0x1fd   :  { %v493_v19 = vpop.f32.mrf.mxu1  ;;  %v534_v20 = vpop.f32.mrf.mxu0 }
 0x1fe   :  { %v494_v21 = vadd.f32 %v493_v19, %v282_v18  ;;  %v535_v49 = vadd.f32 %v534_v20, %v290_v42 }
 0x1ff   :  { %v495_v22 = vpop.f32.mrf.mxu1  ;;  %v1582_v23 = vpop.f32.mrf.mxu0 }
 0x200   :  { %v541_v24 = vmax.f32 %v494_v21, 0.0  ;;  %v496_v46 = vadd.f32 %v495_v22, %v286_v40 }
 0x201   :  { %v497_v25 = vpop.f32.mrf.mxu1  ;;  %v538_v26 = vpop.f32.mrf.mxu0 }
 0x202   :  { %v542_v28 = vpack.c.bf16 %v541_v24, %v541_v24 }
 0x203   :  { %v498_v29 = vpop.f32.mrf.mxu1  ;;  %v539_v30 = vpop.f32.mrf.mxu0 }
 0x204   :  { %1107 = vmatmul.mubr.bf16.vlgmr.msra.gmra.mxu1 %v542_v28 }
 0x205   :  { %1111 = vmatpush3.bf16.msra.mxu1 %v1236_v27  ;;  %1126 = vmatprep.mubr.msk.bf16.mxu1 %vm1460_vm0, %v1459_v0 }
 0x206   :  { %1112 = vmatprep.subr.bf16.mxu1 %v1459_v0 }
 0x209   :  { %1113 = vmatpush3.bf16.msra.mxu1 %v1237_v31 }
 0x20a   :  { %1114 = vmatprep.subr.bf16.mxu1 %v1459_v0 }
 0x20d   :  { %1115 = vmatpush3.bf16.msra.mxu1 %v1238_v32 }
 0x20e   :  { %1116 = vmatprep.subr.bf16.mxu1 %v1459_v0 }
 0x211   :  { %1117 = vmatpush3.bf16.msra.mxu1 %v1239_v33 }
 0x212   :  { %1118 = vmatprep.subr.bf16.mxu1 %v1459_v0 }
 0x215   :  { %1119 = vmatpush3.bf16.msra.mxu1 %v1240_v34 }
 0x216   :  { %1120 = vmatprep.subr.bf16.mxu1 %v1459_v0 }
 0x219   :  { %1121 = vmatpush3.bf16.msra.mxu1 %v1241_v35 }
 0x21a   :  { %1122 = vmatprep.subr.bf16.mxu1 %v1459_v0 }
 0x21d   :  { %v866_v44 = vpop.f32.mrf.mxu0  ;;  %1123 = vmatpush3.bf16.msra.mxu1 %v1242_v39 }
 0x21e   :  { %v867_v47 = vadd.f32 %v866_v44, %v692_v41  ;;  %1124 = vmatprep.subr.bf16.mxu1 %v1459_v0 }
 0x21f   :  { %v868_v48 = vpop.f32.mrf.mxu0 }
 0x220   :  { %v913_v50 = vadd.f32 %v867_v47, %v496_v46  ;;  %v869_v51 = vadd.f32 %v868_v48, %v696_v43 }
 0x221   :  { %1125 = vmatpush3.bf16.msra.mxu1 %v1243_v45  ;;  %v870_v52 = vpop.f32.mrf.mxu0 }
 0x222   :  { %v920_v53 = vadd.f32 %v869_v51, %v535_v49  ;;  %v1041_v55 = vmul.f32 -1.442695, %v913_v50 }
 0x223   :  { %v871_v54 = vpop.f32.mrf.mxu0 }
 0x224   :  { %1127 = vmatmul.mubr.bf16.vlgmr.msra.gmra.mxu1 %v1569_v12  ;;  %1244 = vpow2.f32 %v1041_v55 }
 0x2c4   :  { %v648_v57 = vpop.f32.mrf.mxu1 }
 0x2c5   :  { %v649_v0 = vadd.f32 %v1008_v56, %v648_v57 }
 0x2c6   :  { %v1108_v58 = vpop.f32.mrf.mxu1 }
 0x2c7   :  { %654 = vst [vmem:[#allocation14] sm:$0xff] %v649_v0 }
 0x2c8   :  { %v651_v59 = vpop.f32.mrf.mxu1 }
 0x2c9   :  { %1405 = shalt.err (!%p1402_p11)
}
 0x2ca   :  { %944 = dma.vmem_to_hbm [thread:$0]  %s942_s17, 128, %s1624_s10, [#allocation4]   ;;  %v1109_v60 = vpop.f32.mrf.mxu1  ;;  %v1042_v61 = vmul.f32 -1.442695, %v920_v53  ;;  %v1245_v62 = vpop.eup %1244  ;;  %v293_v1 = vsub.s32 3, %v1573_v15  ;;  %v700_v3 = vrot.slane %v687_v37, %v289_v38 }
 0x2cb   :  { %v917_v63 = vadd.f32 1.0, %v1245_v62  ;;  %s1463_s7 = smov [#allocation15]  }
 0x2cc   :  { %1246 = vpow2.f32 %v1042_v61  ;;  %v294_v4 = vrot.slane %v1579_v17, %v293_v1  ;;  %s951_s10 = sshll.u32 %s1463_s7, 4  ;;  %s952_s10 = int_to_ptr.vmem [resolvable:$true] %s951_s10 }
 0x2cd   :  { %1248 = vrcp.f32 %v917_v63  ;;  %s1414_s21 = scalar_lea.vmem %s952_s10, 128  ;;  %p1419_p13 = scmp.lt.s32.totalorder %s952_s10, %s952_s10 }
 0x2ce   :  { %v537_v10 = vadd.f32 %v1582_v23, %v294_v4  ;;  %p1415_p12 = scmp.ne.s32.totalorder %s952_s10, %s1414_s21  ;;  %p1420_p0 = scmp.lt.s32.totalorder %s1414_s21, %s1414_s21 }
 0x2d0   :  { %p1421_p1 = por %p1420_p0, %p1419_p13 }
 0x2d2   :  { %p1422_p2 = pnand %p1421_p1, %p1415_p12 }
 0x2d9   :  { %v1247_v2 = vpop.eup %1246 }
 0x2da   :  { %v924_v5 = vadd.f32 1.0, %v1247_v2  ;;  %v1249_v8 = vpop.eup %1248 }
 0x2dc   :  { %1250 = vrcp.f32 %v924_v5 }
 0x2e4   :  { %v907_v6 = vpop.f32.mrf.mxu1 }
 0x2e5   :  { %v908_v7 = vadd.f32 %v907_v6, %v700_v3 }
 0x2e6   :  { %v1128_v9 = vpop.f32.mrf.mxu1 }
 0x2e7   :  { %v927_v12 = vmul.f32 %v1249_v8, %v908_v7 }
 0x2e8   :  { %v910_v13 = vpop.f32.mrf.mxu1 }
 0x2e9   :  { %v928_v14 = vadd.f32 %v927_v12, %v537_v10  ;;  %v1251_v18 = vpop.eup %1250 }
 0x2ea   :  { %v1129_v16 = vpop.f32.mrf.mxu1  ;;  %v930_v19 = vsub.f32 1.0, %v1251_v18  ;;  %v932_v17 = vmul.f32 %v1251_v18, %v1564_v11 }
 0x2eb   :  { %1252 = vtanh.f32 %v928_v14 }
 0x2f8   :  { %v1253_v15 = vpop.eup %1252 }
 0x2f9   :  { %v931_v20 = vmul.f32 %v1253_v15, %v930_v19 }
 0x2fb   :  { %v933_v21 = vadd.f32 %v932_v17, %v931_v20 }
 0x2fd   :  { %934 = vst [vmem:[#allocation15] sm:$0xff] %v933_v21 }
 0x2fe   :  { %1425 = shalt.err (!%p1422_p2)
}
 0x2ff   :  { %954 = dma.vmem_to_hbm [thread:$0]  %s952_s10, 128, %s1625_s11, [#allocation16]  }
 0x300   :  { %1442 = dma.done.wait [#allocation4], 128  }
 0x301   :  { %1443 = vsyncadd [#allocation4], 4294967168 }
 0x302   :  { %1444 = dma.done.wait [#allocation16], 128  }
 0x303   :  { %1445 = vsyncadd [#allocation16], 4294967168 }
 0x304   :  { %961 = vsyncpa [#allocation3], 1 }
 0x305   :  { %962 = vsyncpa [#allocation6], 1 }
 0x306   :  { %963 = vsyncpa [#allocation9], 1 }
 0x307   :  { %964 = vsyncpa [#allocation12], 1 }
 0x308   :  { %965 = vsyncpa [#allocation4], 1 }
 0x309   :  { %966 = vsyncpa [#allocation16], 1 }

</bundles_post_ra>
